<compile_context>
chip_gen: v6e
topology: v6e:2x2x1
jax: 0.10.0
libtpu: 0.0.40
codegen_flags: <defaults>
</compile_context>

<pallas_src>
import math
from functools import partial

import jax
import jax.numpy as jnp
from jax import lax
from jax.experimental import pallas as pl
from jax.experimental.pallas import tpu as pltpu


# ----------------------------- in-kernel helpers -----------------------------
def _layernorm(x, gamma, beta, eps):
    mu = jnp.mean(x, axis=-1, keepdims=True)
    var = jnp.mean((x - mu) ** 2, axis=-1, keepdims=True)
    return (x - mu) * lax.rsqrt(var + eps) * gamma + beta


def _gelu_exact(x):
    # nn.GELU() default = exact erf formulation (kept for faithful semantics).
    # TODO(synk): jax.nn.gelu(approximate=True) would move this VALU polynomial to
    # the otherwise-idle EUP tanh path on v6e/v7x if exact-erf is not required.
    return 0.5 * x * (1.0 + lax.erf(x * (1.0 / math.sqrt(2.0))))


# --------------------------------- kernel ------------------------------------
def encoder_block_kernel(*refs, num_heads, eps, causal, tq, tkv, seq_len):
    if causal:
        (x_ref, ln1g_ref, ln1b_ref, wq_ref, bq_ref, wk_ref, bk_ref, wv_ref, bv_ref,
         wap_ref, bap_ref, ln2g_ref, ln2b_ref, wfc_ref, bfc_ref, wmp_ref, bmp_ref,
         o_ref, q_scr, k_scr, v_scr, m_scr, l_scr, acc_scr, cat_scr) = refs
        mask_ref = None
    else:
        (x_ref, mask_ref, ln1g_ref, ln1b_ref, wq_ref, bq_ref, wk_ref, bk_ref, wv_ref,
         bv_ref, wap_ref, bap_ref, ln2g_ref, ln2b_ref, wfc_ref, bfc_ref, wmp_ref,
         bmp_ref, o_ref, q_scr, k_scr, v_scr, m_scr, l_scr, acc_scr, cat_scr) = refs

    H = num_heads
    T = seq_len
    C = x_ref.shape[-1]
    dh = C // H
    f32, bf16 = jnp.float32, jnp.bfloat16
    qi = pl.program_id(1)

    # ---- once per batch row (qi == 0): LN1 + Q/K/V projections (K=C, N=C matmuls),
    #      head-major repack into VMEM scratch persisting across the q-tile axis.
    @pl.when(qi == 0)
    def _project_qkv():
        xf = x_ref[0].astype(f32)                                    # (T, C)
        h1 = _layernorm(xf, ln1g_ref[0], ln1b_ref[0], eps).astype(bf16)

        def project_and_scatter(w_ref, b_ref, dst_scr):
            y = jnp.dot(h1, w_ref[...], preferred_element_type=f32) + b_ref[0]
            # Head-major repack: the only lane-relayout pass, done once per row.
            for h in range(H):
                dst_scr[h] = y[:, h * dh:(h + 1) * dh].astype(bf16)

        project_and_scatter(wq_ref, bq_ref, q_scr)   # 1/sqrt(dh) pre-folded into wq/bq
        project_and_scatter(wk_ref, bk_ref, k_scr)
        project_and_scatter(wv_ref, bv_ref, v_scr)

    q_start = pl.multiple_of(qi * tq, tq)
    q_t = q_scr[:, pl.ds(q_start, tq), :]                            # (H, tq, dh) bf16

    # ---- flash-style online softmax over KV tiles ----
    m_scr[...] = jnp.full(m_scr.shape, -jnp.inf, dtype=f32)
    l_scr[...] = jnp.zeros(l_scr.shape, dtype=f32)
    acc_scr[...] = jnp.zeros(acc_scr.shape, dtype=f32)

    if causal:
        nkv = (q_start + tq + tkv - 1) // tkv        # skip fully-masked KV tiles
    else:
        nkv = T // tkv

    @pl.loop(0, nkv)
    def _kv_step(j):
        kv_start = pl.multiple_of(j * tkv, tkv)
        k_t = k_scr[:, pl.ds(kv_start, tkv), :]                      # (H, tkv, dh)
        v_t = v_scr[:, pl.ds(kv_start, tkv), :]
        # q already carries the 1/sqrt(dh) scale (folded into the weights).
        s = jnp.einsum("hqd,hkd->hqk", q_t, k_t,
                       preferred_element_type=f32)                   # (H, tq, tkv) f32
        if causal:
            row = q_start + lax.broadcasted_iota(jnp.int32, (tq, tkv), 0)
            col = kv_start + lax.broadcasted_iota(jnp.int32, (tq, tkv), 1)
            keep = col <= row
        else:
            keep = mask_ref[j] != 0                                  # (tq, tkv) int8
        s = jnp.where(keep[None, :, :], s, -1e30)

        m_new = jnp.maximum(m_scr[...], jnp.max(s, axis=-1, keepdims=True))
        alpha = jnp.exp(m_scr[...] - m_new)
        # TODO(synk): on v6e/v7x compute this exp in bf16 (EUP-bound stage at dh=64);
        # kept f32 here so v5e (no bf16 EUP) lowers identically.
        e = jnp.exp(s - m_new)                                       # (H, tq, tkv) f32
        l_scr[...] = alpha * l_scr[...] + jnp.sum(e, axis=-1, keepdims=True)
        acc_scr[...] = alpha * acc_scr[...] + jnp.einsum(
            "hqk,hkd->hqd", e.astype(bf16), v_t, preferred_element_type=f32)
        m_scr[...] = m_new

    # Deferred flash normalization: scale the (H, tq, dh) output, not the probs.
    o_h = acc_scr[...] * pl.reciprocal(l_scr[...], approx=True)      # (H, tq, dh) f32

    # Head concat via per-head lane-slice stores, then ONE K=C projection matmul.
    for h in range(H):
        cat_scr[:, h * dh:(h + 1) * dh] = o_h[h].astype(bf16)
    attn = jnp.dot(cat_scr[...], wap_ref[...],
                   preferred_element_type=f32) + bap_ref[0]          # (tq, C)

    # ---- residual 1, LN2, MLP, residual 2 (dropout p = 0 -> identity) ----
    x_rows = x_ref[0, pl.ds(q_start, tq), :].astype(f32)             # (tq, C)
    x1 = x_rows + attn
    h2 = _layernorm(x1, ln2g_ref[0], ln2b_ref[0], eps)
    f = jnp.dot(h2.astype(bf16), wfc_ref[...],
                preferred_element_type=f32) + bfc_ref[0]             # (tq, 4C)
    f = _gelu_exact(f)
    mo = jnp.dot(f.astype(bf16), wmp_ref[...],
                 preferred_element_type=f32) + bmp_ref[0]            # (tq, C)
    o_ref[0] = (x1 + mo).astype(o_ref.dtype)


# -------------------------------- wrapper -------------------------------------
def _const_spec(a, single_buffer=False):
    ndim = a.ndim
    index_map = lambda b, qi, _n=ndim: (0,) * _n
    if single_buffer:
        # Constant-index weights never change across grid steps; a single VMEM
        # buffer avoids dead double-buffer duplication (matters on v7x's 64 MiB).
        try:
            return pl.BlockSpec(a.shape, index_map,
                                pipeline_mode=pl.Buffered(buffer_count=1))
        except TypeError:
            pass  # older BlockSpec signature -> default buffering
    return pl.BlockSpec(a.shape, index_map)


def _vmem_limit_bytes():
    try:
        cap = int(pltpu.get_tpu_info().vmem_capacity_bytes)
    except Exception:
        cap = 64 * 2 ** 20            # conservative (v7x per-TensorCore capacity)
    return max(32 * 2 ** 20, min(112 * 2 ** 20, int(0.85 * cap)))


def encoder_block(x, attn_mask, params, *, num_heads, eps=1e-5, tq=None, tkv=None):
    B, T, C = x.shape
    H = num_heads
    dh = C // H
    causal = attn_mask is None        # matches PyTorch: is_causal = (attn_mask is None)
    f32, bf16 = jnp.float32, jnp.bfloat16

    # Sequence tiling (flash over KV inside the kernel); sweepable.
    if tq is None:
        tq = T if T < 128 else 128
    if tkv is None:
        tkv = T if T < 128 else 128
    assert T % tq == 0 and T % tkv == 0, "seq len must be divisible by tile sizes"
    nq = T // tq
    nkv = T // tkv

    # ---- host-side repack: fold 1/sqrt(dh) into Q projection, split Q/K/V weights
    #      (three K=C, N=C matmuls), bf16 matmul operands, f32 everything else.
    scale = 1.0 / math.sqrt(dh)
    w_qkv = params["w_qkv"].astype(f32)                    # (C, 3C)
    b_qkv = params["b_qkv"].astype(f32).reshape(1, 3 * C)  # (1, 3C)
    wq = (w_qkv[:, 0 * C:1 * C] * scale).astype(bf16)
    wk = w_qkv[:, 1 * C:2 * C].astype(bf16)
    wv = w_qkv[:, 2 * C:3 * C].astype(bf16)
    bq = (b_qkv[:, 0 * C:1 * C] * scale).astype(f32)
    bk = b_qkv[:, 1 * C:2 * C].astype(f32)
    bv = b_qkv[:, 2 * C:3 * C].astype(f32)
    wap = params["w_attn_proj"].astype(bf16)               # (C, C)
    bap = params["b_attn_proj"].reshape(1, C).astype(f32)
    wfc = params["w_fc"].astype(bf16)                      # (C, 4C)
    bfc = params["b_fc"].reshape(1, 4 * C).astype(f32)
    wmp = params["w_mlp_proj"].astype(bf16)                # (4C, C)
    bmp = params["b_mlp_proj"].reshape(1, C).astype(f32)
    ln1g = params["ln1_g"].reshape(1, C).astype(f32)
    ln1b = params["ln1_b"].reshape(1, C).astype(f32)
    ln2g = params["ln2_g"].reshape(1, C).astype(f32)
    ln2b = params["ln2_b"].reshape(1, C).astype(f32)

    param_list = [ln1g, ln1b, wq, bq, wk, bk, wv, bv, wap, bap,
                  ln2g, ln2b, wfc, bfc, wmp, bmp]
    big = {2, 4, 6, 8, 12, 14}                              # the large weight matrices
    param_specs = [_const_spec(p, single_buffer=(i in big))
                   for i, p in enumerate(param_list)]

    in_arrays = [x]
    # Full (T, C) row resident per batch index; its block index is constant across
    # the q-tile axis so it is only DMA'd when the batch index changes.
    in_specs = [pl.BlockSpec((1, T, C), lambda b, qi: (b, 0, 0))]
    if not causal:
        # Boolean-mask semantics (nonzero = attend), shipped as int8 and pre-split
        # into KV tiles on the leading axis so the kernel indexes tiles dynamically
        # on axis 0 (no dynamic lane slicing).  Per-step slab is (nkv, tq, tkv).
        mask8 = (attn_mask != 0).astype(jnp.int8)
        mask_tiled = mask8.reshape(T, nkv, tkv).transpose(1, 0, 2)   # (nkv, T, tkv)
        in_arrays.append(mask_tiled)
        in_specs.append(pl.BlockSpec((nkv, tq, tkv), lambda b, qi: (0, qi, 0)))
    in_arrays += param_list
    in_specs += param_specs

    scratch_shapes = [
        pltpu.VMEM((H, T, dh), bf16),     # Q (head-major, full row, persists over qi)
        pltpu.VMEM((H, T, dh), bf16),     # K
        pltpu.VMEM((H, T, dh), bf16),     # V
        pltpu.VMEM((H, tq, 1), f32),      # running max
        pltpu.VMEM((H, tq, 1), f32),      # running denominator
        pltpu.VMEM((H, tq, dh), f32),     # running numerator
        pltpu.VMEM((tq, C), bf16),        # head-concat buffer for the output proj
    ]

    # ---- advisory cost estimate ----
    t_eff = T // 2 if causal else T
    flops = (2 * B * T * C * 3 * C            # q/k/v projections
             + 4 * B * H * T * t_eff * dh     # qk^T + pv
             + 2 * B * T * C * C              # attention output projection
             + 4 * B * T * C * 4 * C)         # mlp c_fc + c_proj
    transcendentals = B * H * T * t_eff + B * T * 4 * C
    weight_bytes = sum(int(p.size) * p.dtype.itemsize for p in param_list)
    bytes_accessed = (2 * int(x.size) * x.dtype.itemsize + weight_bytes
                      + (0 if causal else B * T * T))

    kernel = partial(encoder_block_kernel, num_heads=H, eps=eps, causal=causal,
                     tq=tq, tkv=tkv, seq_len=T)
    return pl.pallas_call(
        kernel,
        out_shape=jax.ShapeDtypeStruct((B, T, C), x.dtype),
        grid=(B, nq),
        in_specs=in_specs,
        out_specs=pl.BlockSpec((1, tq, C), lambda b, qi: (b, qi, 0)),
        scratch_shapes=scratch_shapes,
        compiler_params=pltpu.CompilerParams(
            # batch axis is independent (megacore-parallel); the q-tile axis reuses
            # the per-row Q/K/V scratch built at qi == 0, so it stays sequential.
            dimension_semantics=("parallel", "arbitrary"),
            vmem_limit_bytes=_vmem_limit_bytes()),
        cost_estimate=pl.CostEstimate(flops=int(flops),
                                      transcendentals=int(transcendentals),
                                      bytes_accessed=int(bytes_accessed)),
    )(*in_arrays)


# ---------------------------- pure-JAX reference -------------------------------
def encoder_block_ref(x, attn_mask, params, *, num_heads, eps=1e-5):
    B, T, C = x.shape
    dh = C // num_heads

    def ln(v, g, b):
        mu = v.mean(-1, keepdims=True)
        var = ((v - mu) ** 2).mean(-1, keepdims=True)
        return (v - mu) / jnp.sqrt(var + eps) * g[0] + b[0]

    h = ln(x, params["ln1_g"], params["ln1_b"])
    qkv = h @ params["w_qkv"] + params["b_qkv"][0]
    q, k, v = jnp.split(qkv, 3, axis=-1)
    q = q.reshape(B, T, num_heads, dh).transpose(0, 2, 1, 3)
    k = k.reshape(B, T, num_heads, dh).transpose(0, 2, 1, 3)
    v = v.reshape(B, T, num_heads, dh).transpose(0, 2, 1, 3)
    s = jnp.einsum("bhqd,bhkd->bhqk", q, k) / math.sqrt(dh)
    s = jnp.where(attn_mask[None, None] != 0, s, -1e30)
    p = jax.nn.softmax(s, axis=-1)
    y = jnp.einsum("bhqk,bhkd->bhqd", p, v).transpose(0, 2, 1, 3).reshape(B, T, C)
    y = y @ params["w_attn_proj"] + params["b_attn_proj"][0]
    x1 = x + y
    h2 = ln(x1, params["ln2_g"], params["ln2_b"])
    f = h2 @ params["w_fc"] + params["b_fc"][0]
    f = 0.5 * f * (1.0 + lax.erf(f / math.sqrt(2.0)))
    m = f @ params["w_mlp_proj"] + params["b_mlp_proj"][0]
    return x1 + m


# ---------------------------------- main ---------------------------------------
if __name__ == "__main__":
    # Small GPT2-like config; T=16 with tq=tkv=8 exercises multi-tile flash,
    # causal KV-tile skipping and the per-row Q/K/V scratch reuse across q tiles.
    B, T, C, H = 2, 16, 32, 4
    key = jax.random.PRNGKey(0)
    keys = jax.random.split(key, 16)
    s = 0.02

    params = {
        "ln1_g": 1.0 + 0.1 * jax.random.normal(keys[0], (1, C), jnp.float32),
        "ln1_b": 0.1 * jax.random.normal(keys[1], (1, C), jnp.float32),
        "w_qkv": s * jax.random.normal(keys[2], (C, 3 * C), jnp.float32),
        "b_qkv": s * jax.random.normal(keys[3], (1, 3 * C), jnp.float32),
        "w_attn_proj": s * jax.random.normal(keys[4], (C, C), jnp.float32),
        "b_attn_proj": s * jax.random.normal(keys[5], (1, C), jnp.float32),
        "ln2_g": 1.0 + 0.1 * jax.random.normal(keys[6], (1, C), jnp.float32),
        "ln2_b": 0.1 * jax.random.normal(keys[7], (1, C), jnp.float32),
        "w_fc": s * jax.random.normal(keys[8], (C, 4 * C), jnp.float32),
        "b_fc": s * jax.random.normal(keys[9], (1, 4 * C), jnp.float32),
        "w_mlp_proj": s * jax.random.normal(keys[10], (4 * C, C), jnp.float32),
        "b_mlp_proj": s * jax.random.normal(keys[11], (1, C), jnp.float32),
    }

    x = jax.random.normal(keys[12], (B, T, C), jnp.float32)
    # Causal boolean attn_mask (1 = attend) -> matches the PyTorch explicit-mask path.
    attn_mask = jnp.tril(jnp.ones((T, T), jnp.int32))

    ref = encoder_block_ref(x, attn_mask, params, num_heads=H, eps=1e-5)

    # Path 1: explicit boolean mask (module's forward signature with attn_mask tensor).
    out_masked = jax.block_until_ready(
        encoder_block(x, attn_mask, params, num_heads=H, eps=1e-5, tq=8, tkv=8))
    # Path 2: attn_mask=None -> is_causal=True; mask generated in-kernel, KV tiles
    # beyond the causal frontier are skipped.
    out_causal = jax.block_until_ready(
        encoder_block(x, None, params, num_heads=H, eps=1e-5, tq=8, tkv=8))

    assert out_masked.shape == (B, T, C)
    assert jnp.allclose(out_masked, ref, atol=1e-2, rtol=1e-2), "explicit-mask path mismatch"
    assert jnp.allclose(out_causal, ref, atol=1e-2, rtol=1e-2), "in-kernel causal path mismatch"

    print("KERNEL_OK")
</pallas_src>

<mosaic_0001>
module attributes {stable_mosaic.version = 11 : i64} {
  func.func @encoder_block_kernel(%arg0: i32, %arg1: i32, %arg2: memref<1x16x32xf32, #tpu.memory_space<vmem>>, %arg3: memref<2x8x8xi8, #tpu.memory_space<vmem>>, %arg4: memref<1x32xf32, #tpu.memory_space<vmem>>, %arg5: memref<1x32xf32, #tpu.memory_space<vmem>>, %arg6: memref<32x32xbf16, #tpu.memory_space<vmem>>, %arg7: memref<1x32xf32, #tpu.memory_space<vmem>>, %arg8: memref<32x32xbf16, #tpu.memory_space<vmem>>, %arg9: memref<1x32xf32, #tpu.memory_space<vmem>>, %arg10: memref<32x32xbf16, #tpu.memory_space<vmem>>, %arg11: memref<1x32xf32, #tpu.memory_space<vmem>>, %arg12: memref<32x32xbf16, #tpu.memory_space<vmem>>, %arg13: memref<1x32xf32, #tpu.memory_space<vmem>>, %arg14: memref<1x32xf32, #tpu.memory_space<vmem>>, %arg15: memref<1x32xf32, #tpu.memory_space<vmem>>, %arg16: memref<32x128xbf16, #tpu.memory_space<vmem>>, %arg17: memref<1x128xf32, #tpu.memory_space<vmem>>, %arg18: memref<128x32xbf16, #tpu.memory_space<vmem>>, %arg19: memref<1x32xf32, #tpu.memory_space<vmem>>, %arg20: memref<1x8x32xf32, #tpu.memory_space<vmem>>, %arg21: memref<4x16x8xbf16, #tpu.memory_space<vmem>>, %arg22: memref<4x16x8xbf16, #tpu.memory_space<vmem>>, %arg23: memref<4x16x8xbf16, #tpu.memory_space<vmem>>, %arg24: memref<4x8x1xf32, #tpu.memory_space<vmem>>, %arg25: memref<4x8x1xf32, #tpu.memory_space<vmem>>, %arg26: memref<4x8x8xf32, #tpu.memory_space<vmem>>, %arg27: memref<8x32xbf16, #tpu.memory_space<vmem>>) attributes {dimension_semantics = [#tpu.dimension_semantics<parallel>, #tpu.dimension_semantics<arbitrary>], iteration_bounds = array<i64: 2, 2>, scalar_prefetch = 0 : i64, scratch_operands = 7 : i64, tpu.core_type = #tpu.core_type<tc>, window_params = [{transform_indices = @transform_0, window_bounds = array<i64: 1, 16, 32>}, {transform_indices = @transform_1, window_bounds = array<i64: 2, 8, 8>}, {pipeline_mode = #tpu.pipeline_mode<synchronous>, transform_indices = @transform_2, window_bounds = array<i64: 1, 32>}, {pipeline_mode = #tpu.pipeline_mode<synchronous>, transform_indices = @transform_3, window_bounds = array<i64: 1, 32>}, {pipeline_mode = #tpu.pipeline_mode<synchronous>, transform_indices = @transform_4, window_bounds = array<i64: 32, 32>}, {pipeline_mode = #tpu.pipeline_mode<synchronous>, transform_indices = @transform_5, window_bounds = array<i64: 1, 32>}, {pipeline_mode = #tpu.pipeline_mode<synchronous>, transform_indices = @transform_6, window_bounds = array<i64: 32, 32>}, {pipeline_mode = #tpu.pipeline_mode<synchronous>, transform_indices = @transform_7, window_bounds = array<i64: 1, 32>}, {pipeline_mode = #tpu.pipeline_mode<synchronous>, transform_indices = @transform_8, window_bounds = array<i64: 32, 32>}, {pipeline_mode = #tpu.pipeline_mode<synchronous>, transform_indices = @transform_9, window_bounds = array<i64: 1, 32>}, {pipeline_mode = #tpu.pipeline_mode<synchronous>, transform_indices = @transform_10, window_bounds = array<i64: 32, 32>}, {pipeline_mode = #tpu.pipeline_mode<synchronous>, transform_indices = @transform_11, window_bounds = array<i64: 1, 32>}, {pipeline_mode = #tpu.pipeline_mode<synchronous>, transform_indices = @transform_12, window_bounds = array<i64: 1, 32>}, {pipeline_mode = #tpu.pipeline_mode<synchronous>, transform_indices = @transform_13, window_bounds = array<i64: 1, 32>}, {pipeline_mode = #tpu.pipeline_mode<synchronous>, transform_indices = @transform_14, window_bounds = array<i64: 32, 128>}, {pipeline_mode = #tpu.pipeline_mode<synchronous>, transform_indices = @transform_15, window_bounds = array<i64: 1, 128>}, {pipeline_mode = #tpu.pipeline_mode<synchronous>, transform_indices = @transform_16, window_bounds = array<i64: 128, 32>}, {pipeline_mode = #tpu.pipeline_mode<synchronous>, transform_indices = @transform_17, window_bounds = array<i64: 1, 32>}, {transform_indices = @transform_18, window_bounds = array<i64: 1, 8, 32>}]} {
    %c0_i32 = arith.constant 0 : i32
    %0 = arith.cmpi eq, %arg1, %c0_i32 : i32
    %1 = arith.extui %0 : i1 to i32
    %c0_i32_0 = arith.constant 0 : i32
    %2 = arith.cmpi ne, %1, %c0_i32_0 : i32
    scf.if %2 {
      %c0_60 = arith.constant 0 : index
      %c0_61 = arith.constant 0 : index
      %c0_62 = arith.constant 0 : index
      %103 = vector.load %arg2[%c0_60, %c0_61, %c0_62] : memref<1x16x32xf32, #tpu.memory_space<vmem>>, vector<1x16x32xf32>
      %104 = vector.shape_cast %103 : vector<1x16x32xf32> to vector<16x32xf32>
      %c0_63 = arith.constant 0 : index
      %c0_64 = arith.constant 0 : index
      %105 = vector.load %arg4[%c0_63, %c0_64] : memref<1x32xf32, #tpu.memory_space<vmem>>, vector<1x32xf32>
      %106 = vector.shape_cast %105 : vector<1x32xf32> to vector<32xf32>
      %c0_65 = arith.constant 0 : index
      %c0_66 = arith.constant 0 : index
      %107 = vector.load %arg5[%c0_65, %c0_66] : memref<1x32xf32, #tpu.memory_space<vmem>>, vector<1x32xf32>
      %108 = vector.shape_cast %107 : vector<1x32xf32> to vector<32xf32>
      %cst_67 = arith.constant dense<0.000000e+00> : vector<16xf32>
      %109 = vector.multi_reduction <add>, %104, %cst_67 [1] : vector<16x32xf32> to vector<16xf32>
      %110 = vector.shape_cast %109 : vector<16xf32> to vector<16x1xf32>
      %cst_68 = arith.constant 3.200000e+01 : f32
      %111 = vector.broadcast %cst_68 : f32 to vector<16x1xf32>
      %112 = arith.divf %110, %111 : vector<16x1xf32>
      %113 = vector.broadcast %112 : vector<16x1xf32> to vector<16x32xf32>
      %114 = arith.subf %104, %113 : vector<16x32xf32>
      %115 = arith.mulf %114, %114 : vector<16x32xf32>
      %cst_69 = arith.constant dense<0.000000e+00> : vector<16xf32>
      %116 = vector.multi_reduction <add>, %115, %cst_69 [1] : vector<16x32xf32> to vector<16xf32>
      %117 = vector.shape_cast %116 : vector<16xf32> to vector<16x1xf32>
      %cst_70 = arith.constant 3.200000e+01 : f32
      %118 = vector.broadcast %cst_70 : f32 to vector<16x1xf32>
      %119 = arith.divf %117, %118 : vector<16x1xf32>
      %120 = vector.broadcast %112 : vector<16x1xf32> to vector<16x32xf32>
      %121 = arith.subf %104, %120 : vector<16x32xf32>
      %cst_71 = arith.constant 9.99999974E-6 : f32
      %122 = vector.broadcast %cst_71 : f32 to vector<16x1xf32>
      %123 = arith.addf %119, %122 : vector<16x1xf32>
      %124 = math.rsqrt %123 : vector<16x1xf32>
      %125 = vector.broadcast %124 : vector<16x1xf32> to vector<16x32xf32>
      %126 = arith.mulf %121, %125 : vector<16x32xf32>
      %127 = vector.shape_cast %106 : vector<32xf32> to vector<1x32xf32>
      %128 = vector.broadcast %127 : vector<1x32xf32> to vector<16x32xf32>
      %129 = arith.mulf %126, %128 : vector<16x32xf32>
      %130 = vector.shape_cast %108 : vector<32xf32> to vector<1x32xf32>
      %131 = vector.broadcast %130 : vector<1x32xf32> to vector<16x32xf32>
      %132 = arith.addf %129, %131 : vector<16x32xf32>
      %133 = arith.truncf %132 : vector<16x32xf32> to vector<16x32xbf16>
      %c0_72 = arith.constant 0 : index
      %c0_73 = arith.constant 0 : index
      %134 = vector.load %arg6[%c0_72, %c0_73] : memref<32x32xbf16, #tpu.memory_space<vmem>>, vector<32x32xbf16>
      %cst_74 = arith.constant dense<0.000000e+00> : vector<16x32xf32>
      %135 = tpu.matmul %133, %134, %cst_74 {dimension_numbers = #tpu.dot_dimension_numbers<[1], [0], [0], [1], [0, 0, 1, 1], [], []>} : vector<16x32xbf16>, vector<32x32xbf16>, vector<16x32xf32> -> vector<16x32xf32>
      %c0_75 = arith.constant 0 : index
      %c0_76 = arith.constant 0 : index
      %136 = vector.load %arg7[%c0_75, %c0_76] : memref<1x32xf32, #tpu.memory_space<vmem>>, vector<1x32xf32>
      %137 = vector.shape_cast %136 : vector<1x32xf32> to vector<32xf32>
      %138 = vector.shape_cast %137 : vector<32xf32> to vector<1x32xf32>
      %139 = vector.broadcast %138 : vector<1x32xf32> to vector<16x32xf32>
      %140 = arith.addf %135, %139 : vector<16x32xf32>
      %141 = vector.extract_strided_slice %140 {offsets = [0, 0], sizes = [16, 8], strides = [1, 1]} : vector<16x32xf32> to vector<16x8xf32>
      %142 = arith.truncf %141 : vector<16x8xf32> to vector<16x8xbf16>
      %c0_77 = arith.constant 0 : index
      %c0_78 = arith.constant 0 : index
      %c0_79 = arith.constant 0 : index
      %143 = vector.load %arg21[%c0_77, %c0_78, %c0_79] : memref<4x16x8xbf16, #tpu.memory_space<vmem>>, vector<1x16x8xbf16>
      %144 = vector.shape_cast %143 : vector<1x16x8xbf16> to vector<16x8xbf16>
      %145 = vector.shape_cast %142 : vector<16x8xbf16> to vector<1x16x8xbf16>
      tpu.vector_store %arg21[%c0_77, %c0_78, %c0_79], %145 {strides = array<i32>} : memref<4x16x8xbf16, #tpu.memory_space<vmem>>, vector<1x16x8xbf16>,
      %146 = vector.extract_strided_slice %140 {offsets = [0, 8], sizes = [16, 8], strides = [1, 1]} : vector<16x32xf32> to vector<16x8xf32>
      %147 = arith.truncf %146 : vector<16x8xf32> to vector<16x8xbf16>
      %c1 = arith.constant 1 : index
      %c0_80 = arith.constant 0 : index
      %c0_81 = arith.constant 0 : index
      %148 = vector.load %arg21[%c1, %c0_80, %c0_81] : memref<4x16x8xbf16, #tpu.memory_space<vmem>>, vector<1x16x8xbf16>
      %149 = vector.shape_cast %148 : vector<1x16x8xbf16> to vector<16x8xbf16>
      %150 = vector.shape_cast %147 : vector<16x8xbf16> to vector<1x16x8xbf16>
      tpu.vector_store %arg21[%c1, %c0_80, %c0_81], %150 {strides = array<i32>} : memref<4x16x8xbf16, #tpu.memory_space<vmem>>, vector<1x16x8xbf16>,
      %151 = vector.extract_strided_slice %140 {offsets = [0, 16], sizes = [16, 8], strides = [1, 1]} : vector<16x32xf32> to vector<16x8xf32>
      %152 = arith.truncf %151 : vector<16x8xf32> to vector<16x8xbf16>
      %c2 = arith.constant 2 : index
      %c0_82 = arith.constant 0 : index
      %c0_83 = arith.constant 0 : index
      %153 = vector.load %arg21[%c2, %c0_82, %c0_83] : memref<4x16x8xbf16, #tpu.memory_space<vmem>>, vector<1x16x8xbf16>
      %154 = vector.shape_cast %153 : vector<1x16x8xbf16> to vector<16x8xbf16>
      %155 = vector.shape_cast %152 : vector<16x8xbf16> to vector<1x16x8xbf16>
      tpu.vector_store %arg21[%c2, %c0_82, %c0_83], %155 {strides = array<i32>} : memref<4x16x8xbf16, #tpu.memory_space<vmem>>, vector<1x16x8xbf16>,
      %156 = vector.extract_strided_slice %140 {offsets = [0, 24], sizes = [16, 8], strides = [1, 1]} : vector<16x32xf32> to vector<16x8xf32>
      %157 = arith.truncf %156 : vector<16x8xf32> to vector<16x8xbf16>
      %c3 = arith.constant 3 : index
      %c0_84 = arith.constant 0 : index
      %c0_85 = arith.constant 0 : index
      %158 = vector.load %arg21[%c3, %c0_84, %c0_85] : memref<4x16x8xbf16, #tpu.memory_space<vmem>>, vector<1x16x8xbf16>
      %159 = vector.shape_cast %158 : vector<1x16x8xbf16> to vector<16x8xbf16>
      %160 = vector.shape_cast %157 : vector<16x8xbf16> to vector<1x16x8xbf16>
      tpu.vector_store %arg21[%c3, %c0_84, %c0_85], %160 {strides = array<i32>} : memref<4x16x8xbf16, #tpu.memory_space<vmem>>, vector<1x16x8xbf16>,
      %c0_86 = arith.constant 0 : index
      %c0_87 = arith.constant 0 : index
      %161 = vector.load %arg8[%c0_86, %c0_87] : memref<32x32xbf16, #tpu.memory_space<vmem>>, vector<32x32xbf16>
      %cst_88 = arith.constant dense<0.000000e+00> : vector<16x32xf32>
      %162 = tpu.matmul %133, %161, %cst_88 {dimension_numbers = #tpu.dot_dimension_numbers<[1], [0], [0], [1], [0, 0, 1, 1], [], []>} : vector<16x32xbf16>, vector<32x32xbf16>, vector<16x32xf32> -> vector<16x32xf32>
      %c0_89 = arith.constant 0 : index
      %c0_90 = arith.constant 0 : index
      %163 = vector.load %arg9[%c0_89, %c0_90] : memref<1x32xf32, #tpu.memory_space<vmem>>, vector<1x32xf32>
      %164 = vector.shape_cast %163 : vector<1x32xf32> to vector<32xf32>
      %165 = vector.shape_cast %164 : vector<32xf32> to vector<1x32xf32>
      %166 = vector.broadcast %165 : vector<1x32xf32> to vector<16x32xf32>
      %167 = arith.addf %162, %166 : vector<16x32xf32>
      %168 = vector.extract_strided_slice %167 {offsets = [0, 0], sizes = [16, 8], strides = [1, 1]} : vector<16x32xf32> to vector<16x8xf32>
      %169 = arith.truncf %168 : vector<16x8xf32> to vector<16x8xbf16>
      %c0_91 = arith.constant 0 : index
      %c0_92 = arith.constant 0 : index
      %c0_93 = arith.constant 0 : index
      %170 = vector.load %arg22[%c0_91, %c0_92, %c0_93] : memref<4x16x8xbf16, #tpu.memory_space<vmem>>, vector<1x16x8xbf16>
      %171 = vector.shape_cast %170 : vector<1x16x8xbf16> to vector<16x8xbf16>
      %172 = vector.shape_cast %169 : vector<16x8xbf16> to vector<1x16x8xbf16>
      tpu.vector_store %arg22[%c0_91, %c0_92, %c0_93], %172 {strides = array<i32>} : memref<4x16x8xbf16, #tpu.memory_space<vmem>>, vector<1x16x8xbf16>,
      %173 = vector.extract_strided_slice %167 {offsets = [0, 8], sizes = [16, 8], strides = [1, 1]} : vector<16x32xf32> to vector<16x8xf32>
      %174 = arith.truncf %173 : vector<16x8xf32> to vector<16x8xbf16>
      %c1_94 = arith.constant 1 : index
      %c0_95 = arith.constant 0 : index
      %c0_96 = arith.constant 0 : index
      %175 = vector.load %arg22[%c1_94, %c0_95, %c0_96] : memref<4x16x8xbf16, #tpu.memory_space<vmem>>, vector<1x16x8xbf16>
      %176 = vector.shape_cast %175 : vector<1x16x8xbf16> to vector<16x8xbf16>
      %177 = vector.shape_cast %174 : vector<16x8xbf16> to vector<1x16x8xbf16>
      tpu.vector_store %arg22[%c1_94, %c0_95, %c0_96], %177 {strides = array<i32>} : memref<4x16x8xbf16, #tpu.memory_space<vmem>>, vector<1x16x8xbf16>,
      %178 = vector.extract_strided_slice %167 {offsets = [0, 16], sizes = [16, 8], strides = [1, 1]} : vector<16x32xf32> to vector<16x8xf32>
      %179 = arith.truncf %178 : vector<16x8xf32> to vector<16x8xbf16>
      %c2_97 = arith.constant 2 : index
      %c0_98 = arith.constant 0 : index
      %c0_99 = arith.constant 0 : index
      %180 = vector.load %arg22[%c2_97, %c0_98, %c0_99] : memref<4x16x8xbf16, #tpu.memory_space<vmem>>, vector<1x16x8xbf16>
      %181 = vector.shape_cast %180 : vector<1x16x8xbf16> to vector<16x8xbf16>
      %182 = vector.shape_cast %179 : vector<16x8xbf16> to vector<1x16x8xbf16>
      tpu.vector_store %arg22[%c2_97, %c0_98, %c0_99], %182 {strides = array<i32>} : memref<4x16x8xbf16, #tpu.memory_space<vmem>>, vector<1x16x8xbf16>,
      %183 = vector.extract_strided_slice %167 {offsets = [0, 24], sizes = [16, 8], strides = [1, 1]} : vector<16x32xf32> to vector<16x8xf32>
      %184 = arith.truncf %183 : vector<16x8xf32> to vector<16x8xbf16>
      %c3_100 = arith.constant 3 : index
      %c0_101 = arith.constant 0 : index
      %c0_102 = arith.constant 0 : index
      %185 = vector.load %arg22[%c3_100, %c0_101, %c0_102] : memref<4x16x8xbf16, #tpu.memory_space<vmem>>, vector<1x16x8xbf16>
      %186 = vector.shape_cast %185 : vector<1x16x8xbf16> to vector<16x8xbf16>
      %187 = vector.shape_cast %184 : vector<16x8xbf16> to vector<1x16x8xbf16>
      tpu.vector_store %arg22[%c3_100, %c0_101, %c0_102], %187 {strides = array<i32>} : memref<4x16x8xbf16, #tpu.memory_space<vmem>>, vector<1x16x8xbf16>,
      %c0_103 = arith.constant 0 : index
      %c0_104 = arith.constant 0 : index
      %188 = vector.load %arg10[%c0_103, %c0_104] : memref<32x32xbf16, #tpu.memory_space<vmem>>, vector<32x32xbf16>
      %cst_105 = arith.constant dense<0.000000e+00> : vector<16x32xf32>
      %189 = tpu.matmul %133, %188, %cst_105 {dimension_numbers = #tpu.dot_dimension_numbers<[1], [0], [0], [1], [0, 0, 1, 1], [], []>} : vector<16x32xbf16>, vector<32x32xbf16>, vector<16x32xf32> -> vector<16x32xf32>
      %c0_106 = arith.constant 0 : index
      %c0_107 = arith.constant 0 : index
      %190 = vector.load %arg11[%c0_106, %c0_107] : memref<1x32xf32, #tpu.memory_space<vmem>>, vector<1x32xf32>
      %191 = vector.shape_cast %190 : vector<1x32xf32> to vector<32xf32>
      %192 = vector.shape_cast %191 : vector<32xf32> to vector<1x32xf32>
      %193 = vector.broadcast %192 : vector<1x32xf32> to vector<16x32xf32>
      %194 = arith.addf %189, %193 : vector<16x32xf32>
      %195 = vector.extract_strided_slice %194 {offsets = [0, 0], sizes = [16, 8], strides = [1, 1]} : vector<16x32xf32> to vector<16x8xf32>
      %196 = arith.truncf %195 : vector<16x8xf32> to vector<16x8xbf16>
      %c0_108 = arith.constant 0 : index
      %c0_109 = arith.constant 0 : index
      %c0_110 = arith.constant 0 : index
      %197 = vector.load %arg23[%c0_108, %c0_109, %c0_110] : memref<4x16x8xbf16, #tpu.memory_space<vmem>>, vector<1x16x8xbf16>
      %198 = vector.shape_cast %197 : vector<1x16x8xbf16> to vector<16x8xbf16>
      %199 = vector.shape_cast %196 : vector<16x8xbf16> to vector<1x16x8xbf16>
      tpu.vector_store %arg23[%c0_108, %c0_109, %c0_110], %199 {strides = array<i32>} : memref<4x16x8xbf16, #tpu.memory_space<vmem>>, vector<1x16x8xbf16>,
      %200 = vector.extract_strided_slice %194 {offsets = [0, 8], sizes = [16, 8], strides = [1, 1]} : vector<16x32xf32> to vector<16x8xf32>
      %201 = arith.truncf %200 : vector<16x8xf32> to vector<16x8xbf16>
      %c1_111 = arith.constant 1 : index
      %c0_112 = arith.constant 0 : index
      %c0_113 = arith.constant 0 : index
      %202 = vector.load %arg23[%c1_111, %c0_112, %c0_113] : memref<4x16x8xbf16, #tpu.memory_space<vmem>>, vector<1x16x8xbf16>
      %203 = vector.shape_cast %202 : vector<1x16x8xbf16> to vector<16x8xbf16>
      %204 = vector.shape_cast %201 : vector<16x8xbf16> to vector<1x16x8xbf16>
      tpu.vector_store %arg23[%c1_111, %c0_112, %c0_113], %204 {strides = array<i32>} : memref<4x16x8xbf16, #tpu.memory_space<vmem>>, vector<1x16x8xbf16>,
      %205 = vector.extract_strided_slice %194 {offsets = [0, 16], sizes = [16, 8], strides = [1, 1]} : vector<16x32xf32> to vector<16x8xf32>
      %206 = arith.truncf %205 : vector<16x8xf32> to vector<16x8xbf16>
      %c2_114 = arith.constant 2 : index
      %c0_115 = arith.constant 0 : index
      %c0_116 = arith.constant 0 : index
      %207 = vector.load %arg23[%c2_114, %c0_115, %c0_116] : memref<4x16x8xbf16, #tpu.memory_space<vmem>>, vector<1x16x8xbf16>
      %208 = vector.shape_cast %207 : vector<1x16x8xbf16> to vector<16x8xbf16>
      %209 = vector.shape_cast %206 : vector<16x8xbf16> to vector<1x16x8xbf16>
      tpu.vector_store %arg23[%c2_114, %c0_115, %c0_116], %209 {strides = array<i32>} : memref<4x16x8xbf16, #tpu.memory_space<vmem>>, vector<1x16x8xbf16>,
      %210 = vector.extract_strided_slice %194 {offsets = [0, 24], sizes = [16, 8], strides = [1, 1]} : vector<16x32xf32> to vector<16x8xf32>
      %211 = arith.truncf %210 : vector<16x8xf32> to vector<16x8xbf16>
      %c3_117 = arith.constant 3 : index
      %c0_118 = arith.constant 0 : index
      %c0_119 = arith.constant 0 : index
      %212 = vector.load %arg23[%c3_117, %c0_118, %c0_119] : memref<4x16x8xbf16, #tpu.memory_space<vmem>>, vector<1x16x8xbf16>
      %213 = vector.shape_cast %212 : vector<1x16x8xbf16> to vector<16x8xbf16>
      %214 = vector.shape_cast %211 : vector<16x8xbf16> to vector<1x16x8xbf16>
      tpu.vector_store %arg23[%c3_117, %c0_118, %c0_119], %214 {strides = array<i32>} : memref<4x16x8xbf16, #tpu.memory_space<vmem>>, vector<1x16x8xbf16>,
    } else {
    }
    %c8_i32 = arith.constant 8 : i32
    %3 = arith.muli %arg1, %c8_i32 : i32
    %4 = tpu.assume_multiple %3, 8 : i32
    %c0 = arith.constant 0 : index
    %5 = arith.index_cast %4 : i32 to index
    %c0_1 = arith.constant 0 : index
    %6 = vector.load %arg21[%c0, %5, %c0_1] : memref<4x16x8xbf16, #tpu.memory_space<vmem>>, vector<4x8x8xbf16>
    %cst = arith.constant 0xFF800000 : f32
    %7 = vector.broadcast %cst : f32 to vector<4x8x1xf32>
    %c0_2 = arith.constant 0 : index
    %c0_3 = arith.constant 0 : index
    %c0_4 = arith.constant 0 : index
    %8 = vector.load %arg24[%c0_2, %c0_3, %c0_4] : memref<4x8x1xf32, #tpu.memory_space<vmem>>, vector<4x8x1xf32>
    tpu.vector_store %arg24[%c0_2, %c0_3, %c0_4], %7 {strides = array<i32>} : memref<4x8x1xf32, #tpu.memory_space<vmem>>, vector<4x8x1xf32>,
    %cst_5 = arith.constant 0.000000e+00 : f32
    %9 = vector.broadcast %cst_5 : f32 to vector<4x8x1xf32>
    %c0_6 = arith.constant 0 : index
    %c0_7 = arith.constant 0 : index
    %c0_8 = arith.constant 0 : index
    %10 = vector.load %arg25[%c0_6, %c0_7, %c0_8] : memref<4x8x1xf32, #tpu.memory_space<vmem>>, vector<4x8x1xf32>
    tpu.vector_store %arg25[%c0_6, %c0_7, %c0_8], %9 {strides = array<i32>} : memref<4x8x1xf32, #tpu.memory_space<vmem>>, vector<4x8x1xf32>,
    %cst_9 = arith.constant 0.000000e+00 : f32
    %11 = vector.broadcast %cst_9 : f32 to vector<4x8x8xf32>
    %c0_10 = arith.constant 0 : index
    %c0_11 = arith.constant 0 : index
    %c0_12 = arith.constant 0 : index
    %12 = vector.load %arg26[%c0_10, %c0_11, %c0_12] : memref<4x8x8xf32, #tpu.memory_space<vmem>>, vector<4x8x8xf32>
    tpu.vector_store %arg26[%c0_10, %c0_11, %c0_12], %11 {strides = array<i32>} : memref<4x8x8xf32, #tpu.memory_space<vmem>>, vector<4x8x8xf32>,
    %c0_i32_13 = arith.constant 0 : i32
    %c2_i32 = arith.constant 2 : i32
    %13 = arith.addi %c0_i32_13, %c2_i32 : i32
    %c1_i32 = arith.constant 1 : i32
    scf.for %arg28 = %c0_i32_13 to %13 step %c1_i32  : i32 {
      %c1_i32_60 = arith.constant 1 : i32
      %103 = arith.muli %arg28, %c1_i32_60 : i32
      %c0_i32_61 = arith.constant 0 : i32
      %104 = arith.addi %c0_i32_61, %103 : i32
      %c8_i32_62 = arith.constant 8 : i32
      %105 = arith.muli %104, %c8_i32_62 : i32
      %106 = tpu.assume_multiple %105, 8 : i32
      %c0_63 = arith.constant 0 : index
      %107 = arith.index_cast %106 : i32 to index
      %c0_64 = arith.constant 0 : index
      %108 = vector.load %arg22[%c0_63, %107, %c0_64] : memref<4x16x8xbf16, #tpu.memory_space<vmem>>, vector<4x8x8xbf16>
      %c0_65 = arith.constant 0 : index
      %109 = arith.index_cast %106 : i32 to index
      %c0_66 = arith.constant 0 : index
      %110 = vector.load %arg23[%c0_65, %109, %c0_66] : memref<4x16x8xbf16, #tpu.memory_space<vmem>>, vector<4x8x8xbf16>
      "tpu.trace_start"() <{level = 10 : i32, message = "hqd,hkd->hqk"}> : () -> ()
      %cst_67 = arith.constant dense<0.000000e+00> : vector<4x8x8xf32>
      %111 = tpu.matmul %6, %108, %cst_67 {dimension_numbers = #tpu.dot_dimension_numbers<[2], [2], [1], [1], [0, 0, 0, 1, 1, 1], [0], [0]>} : vector<4x8x8xbf16>, vector<4x8x8xbf16>, vector<4x8x8xf32> -> vector<4x8x8xf32>
      "tpu.trace_stop"() : () -> ()
      %112 = arith.index_cast %104 : i32 to index
      %c0_68 = arith.constant 0 : index
      %c0_69 = arith.constant 0 : index
      %113 = vector.load %arg3[%112, %c0_68, %c0_69] : memref<2x8x8xi8, #tpu.memory_space<vmem>>, vector<1x8x8xi8>
      %114 = vector.shape_cast %113 : vector<1x8x8xi8> to vector<8x8xi8>
      %c0_i8 = arith.constant 0 : i8
      %115 = vector.broadcast %c0_i8 : i8 to vector<8x8xi8>
      %116 = arith.cmpi ne, %114, %115 : vector<8x8xi8>
      %117 = vector.shape_cast %116 : vector<8x8xi1> to vector<1x8x8xi1>
      %cst_70 = arith.constant -1.000000e+30 : f32
      %118 = vector.shape_cast %117 : vector<1x8x8xi1> to vector<1x8x8xi1>
      %119 = vector.broadcast %118 : vector<1x8x8xi1> to vector<4x8x8xi1>
      %120 = vector.broadcast %cst_70 : f32 to vector<4x8x8xf32>
      %121 = arith.select %119, %111, %120 : vector<4x8x8xi1>, vector<4x8x8xf32>
      %c0_71 = arith.constant 0 : index
      %c0_72 = arith.constant 0 : index
      %c0_73 = arith.constant 0 : index
      %122 = vector.load %arg24[%c0_71, %c0_72, %c0_73] : memref<4x8x1xf32, #tpu.memory_space<vmem>>, vector<4x8x1xf32>
      %cst_74 = arith.constant dense<0xFF800000> : vector<4x8xf32>
      %123 = vector.multi_reduction <maximumf>, %121, %cst_74 [2] : vector<4x8x8xf32> to vector<4x8xf32>
      %124 = vector.shape_cast %123 : vector<4x8xf32> to vector<4x8x1xf32>
      %125 = arith.maximumf %122, %124 : vector<4x8x1xf32>
      %c0_75 = arith.constant 0 : index
      %c0_76 = arith.constant 0 : index
      %c0_77 = arith.constant 0 : index
      %126 = vector.load %arg24[%c0_75, %c0_76, %c0_77] : memref<4x8x1xf32, #tpu.memory_space<vmem>>, vector<4x8x1xf32>
      %127 = arith.subf %126, %125 : vector<4x8x1xf32>
      %128 = math.exp %127 : vector<4x8x1xf32>
      %129 = vector.broadcast %125 : vector<4x8x1xf32> to vector<4x8x8xf32>
      %130 = arith.subf %121, %129 : vector<4x8x8xf32>
      %131 = math.exp %130 : vector<4x8x8xf32>
      %c0_78 = arith.constant 0 : index
      %c0_79 = arith.constant 0 : index
      %c0_80 = arith.constant 0 : index
      %132 = vector.load %arg25[%c0_78, %c0_79, %c0_80] : memref<4x8x1xf32, #tpu.memory_space<vmem>>, vector<4x8x1xf32>
      %133 = arith.mulf %128, %132 : vector<4x8x1xf32>
      %cst_81 = arith.constant dense<0.000000e+00> : vector<4x8xf32>
      %134 = vector.multi_reduction <add>, %131, %cst_81 [2] : vector<4x8x8xf32> to vector<4x8xf32>
      %135 = vector.shape_cast %134 : vector<4x8xf32> to vector<4x8x1xf32>
      %136 = arith.addf %133, %135 : vector<4x8x1xf32>
      %c0_82 = arith.constant 0 : index
      %c0_83 = arith.constant 0 : index
      %c0_84 = arith.constant 0 : index
      %137 = vector.load %arg25[%c0_82, %c0_83, %c0_84] : memref<4x8x1xf32, #tpu.memory_space<vmem>>, vector<4x8x1xf32>
      tpu.vector_store %arg25[%c0_82, %c0_83, %c0_84], %136 {strides = array<i32>} : memref<4x8x1xf32, #tpu.memory_space<vmem>>, vector<4x8x1xf32>,
      %c0_85 = arith.constant 0 : index
      %c0_86 = arith.constant 0 : index
      %c0_87 = arith.constant 0 : index
      %138 = vector.load %arg26[%c0_85, %c0_86, %c0_87] : memref<4x8x8xf32, #tpu.memory_space<vmem>>, vector<4x8x8xf32>
      %139 = vector.broadcast %128 : vector<4x8x1xf32> to vector<4x8x8xf32>
      %140 = arith.mulf %139, %138 : vector<4x8x8xf32>
      %141 = arith.truncf %131 : vector<4x8x8xf32> to vector<4x8x8xbf16>
      "tpu.trace_start"() <{level = 10 : i32, message = "hqk,hkd->hqd"}> : () -> ()
      %cst_88 = arith.constant dense<0.000000e+00> : vector<4x8x8xf32>
      %142 = tpu.matmul %141, %110, %cst_88 {dimension_numbers = #tpu.dot_dimension_numbers<[2], [1], [1], [2], [0, 0, 0, 1, 1, 2], [0], [0]>} : vector<4x8x8xbf16>, vector<4x8x8xbf16>, vector<4x8x8xf32> -> vector<4x8x8xf32>
      "tpu.trace_stop"() : () -> ()
      %143 = arith.addf %140, %142 : vector<4x8x8xf32>
      %c0_89 = arith.constant 0 : index
      %c0_90 = arith.constant 0 : index
      %c0_91 = arith.constant 0 : index
      %144 = vector.load %arg26[%c0_89, %c0_90, %c0_91] : memref<4x8x8xf32, #tpu.memory_space<vmem>>, vector<4x8x8xf32>
      tpu.vector_store %arg26[%c0_89, %c0_90, %c0_91], %143 {strides = array<i32>} : memref<4x8x8xf32, #tpu.memory_space<vmem>>, vector<4x8x8xf32>,
      %c0_92 = arith.constant 0 : index
      %c0_93 = arith.constant 0 : index
      %c0_94 = arith.constant 0 : index
      %145 = vector.load %arg24[%c0_92, %c0_93, %c0_94] : memref<4x8x1xf32, #tpu.memory_space<vmem>>, vector<4x8x1xf32>
      tpu.vector_store %arg24[%c0_92, %c0_93, %c0_94], %125 {strides = array<i32>} : memref<4x8x1xf32, #tpu.memory_space<vmem>>, vector<4x8x1xf32>,
    }
    %c2_i32_14 = arith.constant 2 : i32
    %c0_15 = arith.constant 0 : index
    %c0_16 = arith.constant 0 : index
    %c0_17 = arith.constant 0 : index
    %14 = vector.load %arg26[%c0_15, %c0_16, %c0_17] : memref<4x8x8xf32, #tpu.memory_space<vmem>>, vector<4x8x8xf32>
    %c0_18 = arith.constant 0 : index
    %c0_19 = arith.constant 0 : index
    %c0_20 = arith.constant 0 : index
    %15 = vector.load %arg25[%c0_18, %c0_19, %c0_20] : memref<4x8x1xf32, #tpu.memory_space<vmem>>, vector<4x8x1xf32>
    %16 = tpu.reciprocal %15 {approx = true} : vector<4x8x1xf32> -> vector<4x8x1xf32>
    %17 = vector.broadcast %16 : vector<4x8x1xf32> to vector<4x8x8xf32>
    %18 = arith.mulf %14, %17 : vector<4x8x8xf32>
    %19 = vector.extract_strided_slice %18 {offsets = [0, 0, 0], sizes = [1, 8, 8], strides = [1, 1, 1]} : vector<4x8x8xf32> to vector<1x8x8xf32>
    %20 = vector.shape_cast %19 : vector<1x8x8xf32> to vector<8x8xf32>
    %21 = arith.truncf %20 : vector<8x8xf32> to vector<8x8xbf16>
    %c0_21 = arith.constant 0 : index
    %c0_22 = arith.constant 0 : index
    %22 = vector.load %arg27[%c0_21, %c0_22] : memref<8x32xbf16, #tpu.memory_space<vmem>>, vector<8x8xbf16>
    tpu.vector_store %arg27[%c0_21, %c0_22], %21 {strides = array<i32>} : memref<8x32xbf16, #tpu.memory_space<vmem>>, vector<8x8xbf16>,
    %23 = vector.extract_strided_slice %18 {offsets = [1, 0, 0], sizes = [1, 8, 8], strides = [1, 1, 1]} : vector<4x8x8xf32> to vector<1x8x8xf32>
    %24 = vector.shape_cast %23 : vector<1x8x8xf32> to vector<8x8xf32>
    %25 = arith.truncf %24 : vector<8x8xf32> to vector<8x8xbf16>
    %c0_23 = arith.constant 0 : index
    %c8 = arith.constant 8 : index
    %26 = vector.load %arg27[%c0_23, %c8] : memref<8x32xbf16, #tpu.memory_space<vmem>>, vector<8x8xbf16>
    tpu.vector_store %arg27[%c0_23, %c8], %25 {strides = array<i32>} : memref<8x32xbf16, #tpu.memory_space<vmem>>, vector<8x8xbf16>,
    %27 = vector.extract_strided_slice %18 {offsets = [2, 0, 0], sizes = [1, 8, 8], strides = [1, 1, 1]} : vector<4x8x8xf32> to vector<1x8x8xf32>
    %28 = vector.shape_cast %27 : vector<1x8x8xf32> to vector<8x8xf32>
    %29 = arith.truncf %28 : vector<8x8xf32> to vector<8x8xbf16>
    %c0_24 = arith.constant 0 : index
    %c16 = arith.constant 16 : index
    %30 = vector.load %arg27[%c0_24, %c16] : memref<8x32xbf16, #tpu.memory_space<vmem>>, vector<8x8xbf16>
    tpu.vector_store %arg27[%c0_24, %c16], %29 {strides = array<i32>} : memref<8x32xbf16, #tpu.memory_space<vmem>>, vector<8x8xbf16>,
    %31 = vector.extract_strided_slice %18 {offsets = [3, 0, 0], sizes = [1, 8, 8], strides = [1, 1, 1]} : vector<4x8x8xf32> to vector<1x8x8xf32>
    %32 = vector.shape_cast %31 : vector<1x8x8xf32> to vector<8x8xf32>
    %33 = arith.truncf %32 : vector<8x8xf32> to vector<8x8xbf16>
    %c0_25 = arith.constant 0 : index
    %c24 = arith.constant 24 : index
    %34 = vector.load %arg27[%c0_25, %c24] : memref<8x32xbf16, #tpu.memory_space<vmem>>, vector<8x8xbf16>
    tpu.vector_store %arg27[%c0_25, %c24], %33 {strides = array<i32>} : memref<8x32xbf16, #tpu.memory_space<vmem>>, vector<8x8xbf16>,
    %c0_26 = arith.constant 0 : index
    %c0_27 = arith.constant 0 : index
    %35 = vector.load %arg27[%c0_26, %c0_27] : memref<8x32xbf16, #tpu.memory_space<vmem>>, vector<8x32xbf16>
    %c0_28 = arith.constant 0 : index
    %c0_29 = arith.constant 0 : index
    %36 = vector.load %arg12[%c0_28, %c0_29] : memref<32x32xbf16, #tpu.memory_space<vmem>>, vector<32x32xbf16>
    %cst_30 = arith.constant dense<0.000000e+00> : vector<8x32xf32>
    %37 = tpu.matmul %35, %36, %cst_30 {dimension_numbers = #tpu.dot_dimension_numbers<[1], [0], [0], [1], [0, 0, 1, 1], [], []>} : vector<8x32xbf16>, vector<32x32xbf16>, vector<8x32xf32> -> vector<8x32xf32>
    %c0_31 = arith.constant 0 : index
    %c0_32 = arith.constant 0 : index
    %38 = vector.load %arg13[%c0_31, %c0_32] : memref<1x32xf32, #tpu.memory_space<vmem>>, vector<1x32xf32>
    %39 = vector.shape_cast %38 : vector<1x32xf32> to vector<32xf32>
    %40 = vector.shape_cast %39 : vector<32xf32> to vector<1x32xf32>
    %41 = vector.broadcast %40 : vector<1x32xf32> to vector<8x32xf32>
    %42 = arith.addf %37, %41 : vector<8x32xf32>
    %c0_33 = arith.constant 0 : index
    %43 = arith.index_cast %4 : i32 to index
    %c0_34 = arith.constant 0 : index
    %44 = vector.load %arg2[%c0_33, %43, %c0_34] : memref<1x16x32xf32, #tpu.memory_space<vmem>>, vector<1x8x32xf32>
    %45 = vector.shape_cast %44 : vector<1x8x32xf32> to vector<8x32xf32>
    %46 = arith.addf %45, %42 : vector<8x32xf32>
    %c0_35 = arith.constant 0 : index
    %c0_36 = arith.constant 0 : index
    %47 = vector.load %arg14[%c0_35, %c0_36] : memref<1x32xf32, #tpu.memory_space<vmem>>, vector<1x32xf32>
    %48 = vector.shape_cast %47 : vector<1x32xf32> to vector<32xf32>
    %c0_37 = arith.constant 0 : index
    %c0_38 = arith.constant 0 : index
    %49 = vector.load %arg15[%c0_37, %c0_38] : memref<1x32xf32, #tpu.memory_space<vmem>>, vector<1x32xf32>
    %50 = vector.shape_cast %49 : vector<1x32xf32> to vector<32xf32>
    %cst_39 = arith.constant dense<0.000000e+00> : vector<8xf32>
    %51 = vector.multi_reduction <add>, %46, %cst_39 [1] : vector<8x32xf32> to vector<8xf32>
    %52 = vector.shape_cast %51 : vector<8xf32> to vector<8x1xf32>
    %cst_40 = arith.constant 3.200000e+01 : f32
    %53 = vector.broadcast %cst_40 : f32 to vector<8x1xf32>
    %54 = arith.divf %52, %53 : vector<8x1xf32>
    %55 = vector.broadcast %54 : vector<8x1xf32> to vector<8x32xf32>
    %56 = arith.subf %46, %55 : vector<8x32xf32>
    %57 = arith.mulf %56, %56 : vector<8x32xf32>
    %cst_41 = arith.constant dense<0.000000e+00> : vector<8xf32>
    %58 = vector.multi_reduction <add>, %57, %cst_41 [1] : vector<8x32xf32> to vector<8xf32>
    %59 = vector.shape_cast %58 : vector<8xf32> to vector<8x1xf32>
    %cst_42 = arith.constant 3.200000e+01 : f32
    %60 = vector.broadcast %cst_42 : f32 to vector<8x1xf32>
    %61 = arith.divf %59, %60 : vector<8x1xf32>
    %62 = vector.broadcast %54 : vector<8x1xf32> to vector<8x32xf32>
    %63 = arith.subf %46, %62 : vector<8x32xf32>
    %cst_43 = arith.constant 9.99999974E-6 : f32
    %64 = vector.broadcast %cst_43 : f32 to vector<8x1xf32>
    %65 = arith.addf %61, %64 : vector<8x1xf32>
    %66 = math.rsqrt %65 : vector<8x1xf32>
    %67 = vector.broadcast %66 : vector<8x1xf32> to vector<8x32xf32>
    %68 = arith.mulf %63, %67 : vector<8x32xf32>
    %69 = vector.shape_cast %48 : vector<32xf32> to vector<1x32xf32>
    %70 = vector.broadcast %69 : vector<1x32xf32> to vector<8x32xf32>
    %71 = arith.mulf %68, %70 : vector<8x32xf32>
    %72 = vector.shape_cast %50 : vector<32xf32> to vector<1x32xf32>
    %73 = vector.broadcast %72 : vector<1x32xf32> to vector<8x32xf32>
    %74 = arith.addf %71, %73 : vector<8x32xf32>
    %75 = arith.truncf %74 : vector<8x32xf32> to vector<8x32xbf16>
    %c0_44 = arith.constant 0 : index
    %c0_45 = arith.constant 0 : index
    %76 = vector.load %arg16[%c0_44, %c0_45] : memref<32x128xbf16, #tpu.memory_space<vmem>>, vector<32x128xbf16>
    %cst_46 = arith.constant dense<0.000000e+00> : vector<8x128xf32>
    %77 = tpu.matmul %75, %76, %cst_46 {dimension_numbers = #tpu.dot_dimension_numbers<[1], [0], [0], [1], [0, 0, 1, 1], [], []>} : vector<8x32xbf16>, vector<32x128xbf16>, vector<8x128xf32> -> vector<8x128xf32>
    %c0_47 = arith.constant 0 : index
    %c0_48 = arith.constant 0 : index
    %78 = vector.load %arg17[%c0_47, %c0_48] : memref<1x128xf32, #tpu.memory_space<vmem>>, vector<1x128xf32>
    %79 = vector.shape_cast %78 : vector<1x128xf32> to vector<128xf32>
    %80 = vector.shape_cast %79 : vector<128xf32> to vector<1x128xf32>
    %81 = vector.broadcast %80 : vector<1x128xf32> to vector<8x128xf32>
    %82 = arith.addf %77, %81 : vector<8x128xf32>
    %cst_49 = arith.constant 5.000000e-01 : f32
    %83 = vector.broadcast %cst_49 : f32 to vector<8x128xf32>
    %84 = arith.mulf %83, %82 : vector<8x128xf32>
    %cst_50 = arith.constant 0.707106769 : f32
    %85 = vector.broadcast %cst_50 : f32 to vector<8x128xf32>
    %86 = arith.mulf %82, %85 : vector<8x128xf32>
    %87 = math.erf %86 : vector<8x128xf32>
    %cst_51 = arith.constant 1.000000e+00 : f32
    %88 = vector.broadcast %cst_51 : f32 to vector<8x128xf32>
    %89 = arith.addf %88, %87 : vector<8x128xf32>
    %90 = arith.mulf %84, %89 : vector<8x128xf32>
    %91 = arith.truncf %90 : vector<8x128xf32> to vector<8x128xbf16>
    %c0_52 = arith.constant 0 : index
    %c0_53 = arith.constant 0 : index
    %92 = vector.load %arg18[%c0_52, %c0_53] : memref<128x32xbf16, #tpu.memory_space<vmem>>, vector<128x32xbf16>
    %cst_54 = arith.constant dense<0.000000e+00> : vector<8x32xf32>
    %93 = tpu.matmul %91, %92, %cst_54 {dimension_numbers = #tpu.dot_dimension_numbers<[1], [0], [0], [1], [0, 0, 1, 1], [], []>} : vector<8x128xbf16>, vector<128x32xbf16>, vector<8x32xf32> -> vector<8x32xf32>
    %c0_55 = arith.constant 0 : index
    %c0_56 = arith.constant 0 : index
    %94 = vector.load %arg19[%c0_55, %c0_56] : memref<1x32xf32, #tpu.memory_space<vmem>>, vector<1x32xf32>
    %95 = vector.shape_cast %94 : vector<1x32xf32> to vector<32xf32>
    %96 = vector.shape_cast %95 : vector<32xf32> to vector<1x32xf32>
    %97 = vector.broadcast %96 : vector<1x32xf32> to vector<8x32xf32>
    %98 = arith.addf %93, %97 : vector<8x32xf32>
    %99 = arith.addf %46, %98 : vector<8x32xf32>
    %c0_57 = arith.constant 0 : index
    %c0_58 = arith.constant 0 : index
    %c0_59 = arith.constant 0 : index
    %100 = vector.load %arg20[%c0_57, %c0_58, %c0_59] : memref<1x8x32xf32, #tpu.memory_space<vmem>>, vector<1x8x32xf32>
    %101 = vector.shape_cast %100 : vector<1x8x32xf32> to vector<8x32xf32>
    %102 = vector.shape_cast %99 : vector<8x32xf32> to vector<1x8x32xf32>
    tpu.vector_store %arg20[%c0_57, %c0_58, %c0_59], %102 {strides = array<i32>} : memref<1x8x32xf32, #tpu.memory_space<vmem>>, vector<1x8x32xf32>,
    return
  }
  func.func @transform_0(%arg0: i32, %arg1: i32) -> (i32, i32, i32) {
    %c0_i32 = arith.constant 0 : i32
    %c0_i32_0 = arith.constant 0 : i32
    %c0_i32_1 = arith.constant 0 : i32
    return %arg0, %c0_i32, %c0_i32_0 : i32, i32, i32
  }
  func.func @transform_1(%arg0: i32, %arg1: i32) -> (i32, i32, i32) {
    %c0_i32 = arith.constant 0 : i32
    %c0_i32_0 = arith.constant 0 : i32
    %c0_i32_1 = arith.constant 0 : i32
    return %c0_i32, %arg1, %c0_i32_0 : i32, i32, i32
  }
  func.func @transform_2(%arg0: i32, %arg1: i32) -> (i32, i32) {
    %c0_i32 = arith.constant 0 : i32
    %c0_i32_0 = arith.constant 0 : i32
    %c0_i32_1 = arith.constant 0 : i32
    return %c0_i32, %c0_i32_0 : i32, i32
  }
  func.func @transform_3(%arg0: i32, %arg1: i32) -> (i32, i32) {
    %c0_i32 = arith.constant 0 : i32
    %c0_i32_0 = arith.constant 0 : i32
    %c0_i32_1 = arith.constant 0 : i32
    return %c0_i32, %c0_i32_0 : i32, i32
  }
  func.func @transform_4(%arg0: i32, %arg1: i32) -> (i32, i32) {
    %c0_i32 = arith.constant 0 : i32
    %c0_i32_0 = arith.constant 0 : i32
    %c0_i32_1 = arith.constant 0 : i32
    return %c0_i32, %c0_i32_0 : i32, i32
  }
  func.func @transform_5(%arg0: i32, %arg1: i32) -> (i32, i32) {
    %c0_i32 = arith.constant 0 : i32
    %c0_i32_0 = arith.constant 0 : i32
    %c0_i32_1 = arith.constant 0 : i32
    return %c0_i32, %c0_i32_0 : i32, i32
  }
  func.func @transform_6(%arg0: i32, %arg1: i32) -> (i32, i32) {
    %c0_i32 = arith.constant 0 : i32
    %c0_i32_0 = arith.constant 0 : i32
    %c0_i32_1 = arith.constant 0 : i32
    return %c0_i32, %c0_i32_0 : i32, i32
  }
  func.func @transform_7(%arg0: i32, %arg1: i32) -> (i32, i32) {
    %c0_i32 = arith.constant 0 : i32
    %c0_i32_0 = arith.constant 0 : i32
    %c0_i32_1 = arith.constant 0 : i32
    return %c0_i32, %c0_i32_0 : i32, i32
  }
  func.func @transform_8(%arg0: i32, %arg1: i32) -> (i32, i32) {
    %c0_i32 = arith.constant 0 : i32
    %c0_i32_0 = arith.constant 0 : i32
    %c0_i32_1 = arith.constant 0 : i32
    return %c0_i32, %c0_i32_0 : i32, i32
  }
  func.func @transform_9(%arg0: i32, %arg1: i32) -> (i32, i32) {
    %c0_i32 = arith.constant 0 : i32
    %c0_i32_0 = arith.constant 0 : i32
    %c0_i32_1 = arith.constant 0 : i32
    return %c0_i32, %c0_i32_0 : i32, i32
  }
  func.func @transform_10(%arg0: i32, %arg1: i32) -> (i32, i32) {
    %c0_i32 = arith.constant 0 : i32
    %c0_i32_0 = arith.constant 0 : i32
    %c0_i32_1 = arith.constant 0 : i32
    return %c0_i32, %c0_i32_0 : i32, i32
  }
  func.func @transform_11(%arg0: i32, %arg1: i32) -> (i32, i32) {
    %c0_i32 = arith.constant 0 : i32
    %c0_i32_0 = arith.constant 0 : i32
    %c0_i32_1 = arith.constant 0 : i32
    return %c0_i32, %c0_i32_0 : i32, i32
  }
  func.func @transform_12(%arg0: i32, %arg1: i32) -> (i32, i32) {
    %c0_i32 = arith.constant 0 : i32
    %c0_i32_0 = arith.constant 0 : i32
    %c0_i32_1 = arith.constant 0 : i32
    return %c0_i32, %c0_i32_0 : i32, i32
  }
  func.func @transform_13(%arg0: i32, %arg1: i32) -> (i32, i32) {
    %c0_i32 = arith.constant 0 : i32
    %c0_i32_0 = arith.constant 0 : i32
    %c0_i32_1 = arith.constant 0 : i32
    return %c0_i32, %c0_i32_0 : i32, i32
  }
  func.func @transform_14(%arg0: i32, %arg1: i32) -> (i32, i32) {
    %c0_i32 = arith.constant 0 : i32
    %c0_i32_0 = arith.constant 0 : i32
    %c0_i32_1 = arith.constant 0 : i32
    return %c0_i32, %c0_i32_0 : i32, i32
  }
  func.func @transform_15(%arg0: i32, %arg1: i32) -> (i32, i32) {
    %c0_i32 = arith.constant 0 : i32
    %c0_i32_0 = arith.constant 0 : i32
    %c0_i32_1 = arith.constant 0 : i32
    return %c0_i32, %c0_i32_0 : i32, i32
  }
  func.func @transform_16(%arg0: i32, %arg1: i32) -> (i32, i32) {
    %c0_i32 = arith.constant 0 : i32
    %c0_i32_0 = arith.constant 0 : i32
    %c0_i32_1 = arith.constant 0 : i32
    return %c0_i32, %c0_i32_0 : i32, i32
  }
  func.func @transform_17(%arg0: i32, %arg1: i32) -> (i32, i32) {
    %c0_i32 = arith.constant 0 : i32
    %c0_i32_0 = arith.constant 0 : i32
    %c0_i32_1 = arith.constant 0 : i32
    return %c0_i32, %c0_i32_0 : i32, i32
  }
  func.func @transform_18(%arg0: i32, %arg1: i32) -> (i32, i32, i32) {
    %c0_i32 = arith.constant 0 : i32
    %c0_i32_0 = arith.constant 0 : i32
    return %arg0, %arg1, %c0_i32 : i32, i32, i32
  }
}

</mosaic_0001>

<bundles_post_ra>
// kernel: tpu_custom_call.1
= control target key start
LH: loop header
LB: loop body
LE: loop exit
PB: predicated region body
PF: predicated region fallthrough
CT: control target
= control target key end

     0   :  { %s3709_s0 = inlined_call_operand.vmem [shape: f32[2,16,32], index: 0, kind: input, shape index: {}]   ;;  %s3710_s1 = inlined_call_operand.vmem [shape: s8[2,16,8], index: 1, kind: input, shape index: {}]   ;;  %s3711_s2 = inlined_call_operand.hbm [shape: f32[1,32], index: 2, kind: input, shape index: {}]   ;;  %s3712_s3 = inlined_call_operand.hbm [shape: f32[1,32], index: 3, kind: input, shape index: {}]   ;;  %s3713_s4 = inlined_call_operand.vmem [shape: bf16[32,32], index: 4, kind: input, shape index: {}]   ;;  %s3714_s5 = inlined_call_operand.hbm [shape: f32[1,32], index: 5, kind: input, shape index: {}]   ;;  %s3715_s6 = inlined_call_operand.vmem [shape: bf16[32,32], index: 6, kind: input, shape index: {}]   ;;  %s3716_s7 = inlined_call_operand.hbm [shape: f32[1,32], index: 7, kind: input, shape index: {}]   ;;  %s3717_s8 = inlined_call_operand.vmem [shape: bf16[32,32], index: 8, kind: input, shape index: {}]   ;;  %s3718_s9 = inlined_call_operand.hbm [shape: f32[1,32], index: 9, kind: input, shape index: {}]   ;;  %s3719_s10 = inlined_call_operand.vmem [shape: bf16[32,32], index: 10, kind: input, shape index: {}]   ;;  %s3720_s11 = inlined_call_operand.hbm [shape: f32[1,32], index: 11, kind: input, shape index: {}]   ;;  %s3721_s12 = inlined_call_operand.vmem [shape: f32[1,32], index: 12, kind: input, shape index: {}]   ;;  %s3722_s13 = inlined_call_operand.vmem [shape: f32[1,32], index: 13, kind: input, shape index: {}]   ;;  %s3723_s14 = inlined_call_operand.hbm [shape: bf16[32,128], index: 14, kind: input, shape index: {}]   ;;  %s3724_s15 = inlined_call_operand.vmem [shape: f32[1,128], index: 15, kind: input, shape index: {}]   ;;  %s3725_s16 = inlined_call_operand.vmem [shape: bf16[128,32], index: 16, kind: input, shape index: {}]   ;;  %s3726_s17 = inlined_call_operand.vmem [shape: f32[1,32], index: 17, kind: input, shape index: {}]   ;;  %s3727_s18 = inlined_call_operand.hbm [shape: f32[2,16,32], index: 18, kind: output, shape index: {}]  }
   0x1   :  { %3741 = sst [smem:[#allocation35_spill]] %s3709_s0 }
   0x2   :  { %3742 = sst [smem:[#allocation36_spill]] %s3710_s1 }
   0x3   :  { %3743 = sst [smem:[#allocation37_spill]] %s3711_s2 }
   0x4   :  { %3744 = sst [smem:[#allocation38_spill]] %s3712_s3 }
   0x5   :  { %3745 = sst [smem:[#allocation39_spill]] %s3714_s5 }
   0x6   :  { %3746 = sst [smem:[#allocation40_spill]] %s3717_s8 }
   0x7   :  { %3747 = sst [smem:[#allocation41_spill]] %s3719_s10 }
   0x8   :  { %3748 = sst [smem:[#allocation42_spill]] %s3721_s12 }
   0x9   :  { %3749 = sst [smem:[#allocation43_spill]] %s3722_s13 }
   0xa   :  { %3750 = sst [smem:[#allocation44_spill]] %s3724_s15 }
   0xb   :  { %3751 = sst [smem:[#allocation45_spill]] %s3725_s16 }
   0xc   :  { %3752 = sst [smem:[#allocation46_spill]] %s3726_s17 }
   0xd   :  { %3753 = sst [smem:[#allocation47_spill]] %s3727_s18 }
   0xe   :  { %23 = vsyncpa [#allocation11], 0 }
   0xf   :  { %24 = vsyncpa [#allocation14], 0 }
  0x10   :  { %25 = vsyncpa [#allocation17], 0 }
  0x11   :  { %26 = vsyncpa [#allocation20], 0 }
  0x12   :  { %27 = vsyncpa [#allocation12], 0 }
  0x13   :  { %29 = vsyncpa [#allocation12 + $0x1], 0  ;;  %s3123_s27 = smov 0   ;;  %s3125_s28 = smov 0  }
  0x14   :  { %s3127_s29 = smov 0   ;;  %s3129_s30 = smov 0  }
  0x15   :  { %s3131_s0 = smov 0   ;;  %s3133_s19 = smov 0  }
  0x16   :  { %s3135_s1 = smov 0   ;;  %s3137_s20 = smov 0  }
  0x17   :  { %s3139_s21 = smov 0   ;;  %s3141_s22 = smov 0  }
  0x18 LB: > { %3754 = sst [smem:[#allocation28_spill]] %s2969_s29  ;;  %s2205_s2 = sadd.s32 4294967295, %s2997_s22   ;;  %s2997_s22 = sphi %s3141_s22, %s35_s22   ;;  %s2993_s21 = sphi %s3139_s21, %s3794_s21   ;;  %s2989_s20 = sphi %s3137_s20, %s3800_s20   ;;  %s2985_s1 = sphi %s3135_s1, %s3792_s1   ;;  %s2981_s19 = sphi %s3133_s19, %s3799_s19   ;;  %s2977_s0 = sphi %s3131_s0, %s3798_s0   ;;  %s2973_s30 = sphi %s3129_s30, %s3797_s30   ;;  %s2969_s29 = sphi %s3127_s29, %s3790_s29   ;;  %s2965_s28 = sphi %s3125_s28, %s3796_s28   ;;  %s2961_s27 = sphi %s3123_s27, %s3795_s27  }
  0x19   : > { %3755 = sst [smem:[#allocation29_spill]] %s2993_s21  ;;  %s2206_s23 = sadd.s32 4294967294, %s2997_s22  }
  0x1a   : > { %s44_s24 = sadd.s32 1, %s2989_s20  ;;  %s47_s25 = sadd.s32 1, %s2993_s21 }
  0x1b   : > { %p45_p0 = scmp.ge.s32.totalorder %s44_s24, 2  ;;  %s80_s26 = sadd.s32 1, %s2977_s0 }
  0x1c   : > { %p87_p1 = scmp.ne.s32.totalorder %s2977_s0, %s2973_s30  ;;  %p88_p2 = scmp.eq.s32.totalorder %s2997_s22, 0 }
  0x1d   : > { %s3802_s24 = smov (%p45_p0, %s44_s24), 0  ;;  %s3804_s25 = smov (!%p45_p0, %s47_s25), %s2993_s21 }
  0x1e   : > { %3756 = sst [smem:[#allocation30_spill]] %s3802_s24  ;;  %s77_s18 = ssub.s32 %s2989_s20, %s3802_s24 }
  0x1f   : > { %p3186_p3 = por %p88_p2, %p87_p1  ;;  %p49_p4 = scmp.ge.s32.totalorder %s3804_s25, 2 }
  0x20   : > { %p78_p5 = scmp.eq.s32.totalorder %s77_s18, 0  ;;  %s444_s15 = sadd.s32 1, %s2969_s29 }
  0x21   : > { %s3757_s17 = scalar_select %p3186_p3, 1, 0 }
  0x22   : > { %p454_p6 = scmp.ne.s32.totalorder %s2969_s29, %s2965_s28  ;;  %s3806_s25 = smov (%p49_p4, %s3804_s25), 0 }
  0x23   : > { %3758 = sst [smem:[#allocation31_spill]] %s3806_s25  ;;  %s439_s12 = ssub.s32 %s2993_s21, %s3806_s25 }
  0x24   : > { %s3196_s13 = scalar_select %p78_p5, %s2977_s0, %s80_s26  }
  0x25   : > { %p455_p7 = scmp.eq.s32.totalorder %s2205_s2, 3  ;;  %s441_s16 = sor.u32 %s439_s12, %s77_s18 }
  0x26   : > { %3759 = sst [smem:[#allocation32_spill]] %s3196_s13  ;;  %p460_p8 = scmp.ne.s32.totalorder %s2965_s28, %s2961_s27 }
  0x27   : > { %p442_p9 = scmp.eq.s32.totalorder %s441_s16, 0  ;;  %p3202_p10 = por %p455_p7, %p454_p6 }
  0x28   : > { %p461_p11 = scmp.eq.s32.totalorder %s2206_s23, 3  ;;  %p2207_p12 = scmp.ge.s32.totalorder %s2997_s22, 1 }
  0x29   : > { %s3760_s24 = scalar_select %p3202_p10, 1, 0 }
  0x2a   : > { %s3208_s10 = scalar_select %p442_p9, %s2969_s29, %s444_s15  }
  0x2b   : > { %p3210_p13 = por %p461_p11, %p460_p8  ;;  %p468_p0 = scmp.lt.s32.totalorder %s2997_s22, 5 }
  0x2c   : > { %3761 = sst [smem:[#allocation33_spill]] %s3208_s10  ;;  %p3215_p1 = scmp.eq.s32.totalorder %s2205_s2, 0 }
  0x2d   : > { %s3762_s8 = scalar_select %p3210_p13, 1, 0 }
  0x2e   : > { %s3764_s26 = scalar_select %p3215_p1, 1, 0 }
  0x2f   : > { %3763 = sst [smem:[#allocation34_spill]] %s3762_s8  ;;  %p3219_p2 = pnand %p2207_p12, %p468_p0 }
  0x30   : > { %s3003_s16 = smov [#allocation13]   ;;  %s3004_s15 = smov [#allocation16]  }
  0x31   : > { %s3765_s12 = scalar_select %p3219_p2, 1, 0 }
  0x32   : > { %s492_s18 = sshll.u32 %s3003_s16, 4  ;;  %p2480_p4 = pneg %p3219_p2  ;;  %s493_s18 = int_to_ptr.vmem [resolvable:$true] %s492_s18 }
  0x33   : > { %s520_s23 = sshll.u32 %s3004_s15, 4  ;;  %s3005_s2 = smov [#allocation19]   ;;  %s521_s23 = int_to_ptr.vmem [resolvable:$true] %s520_s23 }
  0x34   : > { %p3227_p5 = pnand %p3215_p1, %p2480_p4  ;;  %s548_s21 = sshll.u32 %s3005_s2, 4  ;;  %s3231_s21 = int_to_ptr.vmem [resolvable:$true] %s548_s21 }
  0x35   : > { %s2698_s16 = scalar_lea.vmem %s493_s18, 16  ;;  %s2705_s15 = scalar_lea.vmem %s493_s18, 32 }
  0x36   : > { %p3235_p6 = pneg %p3227_p5  ;;  %p2699_p7 = scmp.ne.s32.totalorder %s493_s18, %s2698_s16 }
  0x37   : > { %p2706_p11 = scmp.lt.s32.totalorder %s493_s18, %s493_s18  ;;  %p2707_p12 = scmp.lt.s32.totalorder %s2705_s15, %s2698_s16 }
  0x38   : > { %p2701_p8 = pnand %p2699_p7, %p3235_p6 }
  0x39   : > { %p2708_p0 = por %p2707_p12, %p2706_p11 }
  0x3a   : > { %p2702_p9 = pneg %p2701_p8 }
  0x3c   : > { %p2709_p4 = pnand %p2708_p0, %p2702_p9 }
  0x3e   : > { %2712 = shalt.err (!%p2709_p4)
}
  0x3f   : > { %s3768_s3 = sld [smem:[#allocation38_spill]]  ;;  %s2724_s29 = scalar_lea.vmem %s521_s23, 16 }
  0x40   : > { %p2725_p13 = scmp.ne.s32.totalorder %s521_s23, %s2724_s29  ;;  %s2731_s8 = scalar_lea.vmem %s521_s23, 32 }
  0x41   : > { %p2732_p7 = scmp.lt.s32.totalorder %s521_s23, %s521_s23  ;;  %p2733_p8 = scmp.lt.s32.totalorder %s2731_s8, %s2724_s29 }
  0x42   : > { %p2727_p10 = pnand %p2725_p13, %p3235_p6 }
  0x43   : > { %p2734_p2 = por %p2733_p8, %p2732_p7 }
  0x44   : > { %p2728_p1 = pneg %p2727_p10 }
  0x45   : > { %2486 = dma.hbm_to_vmem [thread:$0]  (!%p3227_p5), %s3768_s3, 16, %s493_s18, [#allocation14]  }
  0x46   : > { %p2735_p3 = pnand %p2734_p2, %p2728_p1 }
  0x48   : > { %2738 = shalt.err (!%p2735_p3)
}
  0x49   : > { %2492 = dma.hbm_to_vmem [thread:$0]  (!%p3227_p5), %s3716_s7, 16, %s521_s23, [#allocation17]  }
  0x4a   : > { %s2750_s10 = scalar_lea.vmem %s3231_s21, 16  ;;  %s2757_s8 = scalar_lea.vmem %s3231_s21, 32 }
  0x4b   : > { %p2751_p13 = scmp.ne.s32.totalorder %s3231_s21, %s2750_s10  ;;  %p2758_p1 = scmp.lt.s32.totalorder %s3231_s21, %s3231_s21 }
  0x4c   : > { %p2759_p3 = scmp.lt.s32.totalorder %s2757_s8, %s2750_s10 }
  0x4d   : > { %p2753_p10 = pnand %p2751_p13, %p3235_p6 }
  0x4e   : > { %p2760_p2 = por %p2759_p3, %p2758_p1 }
  0x4f   : > { %p2754_p9 = pneg %p2753_p10 }
  0x51   : > { %p2761_p11 = pnand %p2760_p2, %p2754_p9 }
  0x53   : > { %2764 = shalt.err (!%p2761_p11)
}
  0x54   : > { %2498 = dma.hbm_to_vmem [thread:$0]  (!%p3227_p5), %s3720_s11, 16, %s3231_s21, [#allocation20]  }
  0x55   : > { %s3006_s23 = smov [#allocation10]   ;;  %s3007_s16 = smov [#allocation15]  }
  0x56   : > { %s481_s2 = sshll.u32 %s3006_s23, 4  ;;  %s506_s15 = sshll.u32 %s3007_s16, 4  ;;  %s482_s2 = int_to_ptr.vmem [resolvable:$true] %s481_s2  ;;  %s507_s15 = int_to_ptr.vmem [resolvable:$true] %s506_s15 }
  0x57   : > { %s2776_s3 = scalar_lea.vmem %s482_s2, 16  ;;  %s2783_s10 = scalar_lea.vmem %s482_s2, 32 }
  0x58   : > { %p2777_p12 = scmp.ne.s32.totalorder %s482_s2, %s2776_s3  ;;  %p2784_p7 = scmp.lt.s32.totalorder %s482_s2, %s482_s2 }
  0x59   : > { %p2785_p8 = scmp.lt.s32.totalorder %s2783_s10, %s2776_s3 }
  0x5a   : > { %p2779_p0 = pnand %p2777_p12, %p3235_p6 }
  0x5b   : > { %p2786_p13 = por %p2785_p8, %p2784_p7 }
  0x5c   : > { %p2780_p4 = pneg %p2779_p0 }
  0x5e   : > { %p2787_p10 = pnand %p2786_p13, %p2780_p4 }
  0x60   : > { %2790 = shalt.err (!%p2787_p10)
}
  0x61   : > { %s3769_s29 = sld [smem:[#allocation37_spill]]  ;;  %s2802_s18 = scalar_lea.vmem %s507_s15, 16 }
  0x62   : > { %p2803_p9 = scmp.ne.s32.totalorder %s507_s15, %s2802_s18  ;;  %s2809_s23 = scalar_lea.vmem %s507_s15, 32 }
  0x63   : > { %p2810_p2 = scmp.lt.s32.totalorder %s507_s15, %s507_s15  ;;  %p2811_p11 = scmp.lt.s32.totalorder %s2809_s23, %s2802_s18 }
  0x64   : > { %p2805_p1 = pnand %p2803_p9, %p3235_p6 }
  0x65   : > { %p2812_p12 = por %p2811_p11, %p2810_p2 }
  0x66   : > { %p2806_p3 = pneg %p2805_p1 }
  0x67   : > { %2483 = dma.hbm_to_vmem [thread:$0]  (!%p3227_p5), %s3769_s29, 16, %s482_s2, [#allocation11]  }
  0x68   : > { %p2813_p0 = pnand %p2812_p12, %p2806_p3 }
  0x6a   : > { %2816 = shalt.err (!%p2813_p0)
}
  0x6b   : > { %s3770_s5 = sld [smem:[#allocation39_spill]]  ;;  %s3008_s2 = smov [#allocation18]  }
  0x6c   : > { %s534_s10 = sshll.u32 %s3008_s2, 4  ;;  %s3009_s8 = smov [#allocation21]   ;;  %s535_s10 = int_to_ptr.vmem [resolvable:$true] %s534_s10 }
  0x6d   : > { %s564_s21 = sshll.u32 %s3009_s8, 4  ;;  %s2828_s29 = scalar_lea.vmem %s535_s10, 16  ;;  %s565_s21 = int_to_ptr.vmem [resolvable:$true] %s564_s21 }
  0x6e   : > { %p2829_p4 = scmp.ne.s32.totalorder %s535_s10, %s2828_s29  ;;  %s2835_s18 = scalar_lea.vmem %s535_s10, 32 }
  0x6f   : > { %p2836_p13 = scmp.lt.s32.totalorder %s535_s10, %s535_s10  ;;  %p2837_p10 = scmp.lt.s32.totalorder %s2835_s18, %s2828_s29 }
  0x70   : > { %p2831_p7 = pnand %p2829_p4, %p3235_p6 }
  0x71   : > { %2489 = dma.hbm_to_vmem [thread:$0]  (!%p3227_p5), %s3770_s5, 16, %s507_s15, [#allocation14]  }
  0x72   : > { %p2832_p8 = pneg %p2831_p7  ;;  %p2838_p9 = por %p2837_p10, %p2836_p13 }
  0x74   : > { %p2839_p1 = pnand %p2838_p9, %p2832_p8 }
  0x76   : > { %2842 = shalt.err (!%p2839_p1)
}
  0x77   : > { %2495 = dma.hbm_to_vmem [thread:$0]  (!%p3227_p5), %s3718_s9, 16, %s535_s10, [#allocation17]  }
  0x78   : > { %s2854_s3 = scalar_lea.vmem %s565_s21, 256  ;;  %p2862_p12 = scmp.lt.s32.totalorder %s565_s21, %s565_s21 }
  0x79   : > { %p2855_p3 = scmp.ne.s32.totalorder %s565_s21, %s2854_s3  ;;  %p2863_p0 = scmp.lt.s32.totalorder %s2854_s3, %s2854_s3 }
  0x7b   : > { %p2857_p2 = pnand %p2855_p3, %p3235_p6  ;;  %p2864_p4 = por %p2863_p0, %p2862_p12 }
  0x7d   : > { %p2858_p11 = pneg %p2857_p2 }
  0x7f   : > { %p2865_p7 = pnand %p2864_p4, %p2858_p11 }
  0x81   : > { %2868 = shalt.err (!%p2865_p7)
}
  0x82   : > { %s3010_s16 = smov 64   ;;  %s3011_s2 = smov 4  }
  0x83   : > { %2501 = dma.hbm_to_vmem [thread:$0]  (!%p3227_p5), %s3723_s14, 256, %s565_s21, [#allocation20], %s3010_s16, %s3010_s16, %s3011_s2  }
  0x84   : > { %p2215_p8 = scmp.ge.s32.totalorder %s2997_s22, 4 }
  0x85   : > { %p3771_p13 = scmp.ne.s32.totalorder (!%p2215_p8), %s3757_s17, 0 }
  0x86   : > { %583 = sbr.rel (%p2215_p8) target bundleno = 150 (0x96), region = 80 }
  0x8b   : > { %594 = sbr.rel (!%p3771_p13) target bundleno = 150 (0x96), region = 88  ;;  %s596_s13 = sand.u32 (%p3771_p13), 1, %s2977_s0  }
  0x8c   : > { %s2217_s10 = sshll.u32 (%p3771_p13), %s2989_s20, 1  ;;  %s2216_s18 = sshll.u32 (%p3771_p13), %s596_s13, 2 }
  0x8d   : > { %s3772_s3 = sld [smem:[#allocation36_spill]] (%p3771_p13)  ;;  %s598_s25 = scalar_lea.vmem (%p3771_p13), [#allocation9], %s2216_s18 }
  0x93   : > { %s600_s5 = scalar_lea.vmem %s3772_s3, %s2217_s10 }
  0x94   : > { %v617_v0 = vld [vmem:[%s600_s5] sm:$0x3]  ;;  %v619_v1 = vld [vmem:[%s600_s5 + $0x4] sm:$0x3] }
  0x95   : > { %618 = vst [vmem:[%s598_s25] sm:$0x3] %v617_v0  ;;  %620 = vst [vmem:[%s598_s25 + $0x2] sm:$0x3] %v619_v1 }
  0x96 PF: > { %p3773_p5 = scmp.ne.s32.totalorder %s3765_s12, 0 }
  0x97   : > { %s646_s17 = sand.u32 (!%p3773_p5), 1, %s2973_s30   ;;  %p3774_p6 = scmp.ne.s32.totalorder (!%p3773_p5), %s3764_s26, 0 }
  0x98   : > { %643 = sbr.rel (%p3773_p5) target bundleno = 2743 (0xab7), region = 122  ;;  %s3305_s21 = sshll.u32 (!%p3773_p5), %s646_s17, 2 }
  0x99   : > { %s648_s16 = scalar_lea.vmem (!%p3773_p5), [#allocation9], %s3305_s21 }
  0x9d   : > { %2940 = dma.done.wait (%p3774_p6), [#allocation11], 16  }
  0x9e   : > { %2942 = vsyncadd (%p3774_p6), [#allocation11], 4294967280 }
  0x9f   : > { %2944 = dma.done.wait (%p3774_p6), [#allocation14], 32  }
  0xa0   : > { %2946 = vsyncadd (%p3774_p6), [#allocation14], 4294967264 }
  0xa1   : > { %2948 = dma.done.wait (%p3774_p6), [#allocation17], 32  }
  0xa2   : > { %2950 = vsyncadd (%p3774_p6), [#allocation17], 4294967264 }
  0xa3   : > { %2952 = dma.done.wait (%p3774_p6), [#allocation20], 272  }
  0xa4   : > { %2954 = vsyncadd (%p3774_p6), [#allocation20], 4294967024  ;;  %s729_s5 = sand.u32 1, %s2965_s28   ;;  %p732_p10 = scmp.lt.s32.totalorder %s2985_s1, 1 }
  0xa5   : > { %s3328_s30 = sshll.u32 %s729_s5, 3  ;;  %s3775_s13 = sld [smem:[#allocation35_spill]] }
  0xa6   : > { %s733_s12 = scalar_select %p732_p10, %s2985_s1, 1 }
  0xa7   : > { %s731_s18 = scalar_lea.vmem [#allocation22], %s3328_s30  ;;  %p2230_p9 = scmp.ne.s32.totalorder %s2981_s19, 0 }
  0xa8   : > { %s2292_s2 = sshll.u32 %s733_s12, 4  ;;  %s3014_s15 = smov (!%p2230_p9), 112  }
  0xa9   : > { %743 = sbr.rel (%p2230_p9) target bundleno = 838 (0x346), region = 158  ;;  %s3015_s3 = smov (!%p2230_p9), 120  }
  0xaa   : > { %s3016_s25 = smov (!%p2230_p9), 104  }
  0xab   : > { %s3334_s10 = scalar_lea.vmem %s3775_s13, %s2292_s2  ;;  %s3776_s13 = sld [smem:[#allocation40_spill]] (!%p2230_p9) }
  0xae   : > { %v744_v2 = vld [vmem:[%s3334_s10] sm:$0xff]  ;;  %vm748_vm0 = vcmask 261120   ;;  %v745_v3 = vld [vmem:[%s3334_s10 + $0x8] sm:$0xff]  ;;  %v3012_v18 = vmov 0.0   ;;  %vm3013_vm1 = vmmov 0   ;;  %vm868_vm2 = vcmask 60416  }
  0xaf   : > { %v749_v4 = vsel %vm748_vm0, %v744_v2, 0.0  ;;  %v752_v5 = vsel %vm748_vm0, %v745_v3, 0.0  ;;  %v2633_v16 = vld [vmem:[%s3713_s4 + $0x8] sm:$0xff]   ;;  %2342 = vmatprep.subr.bf16.mxu0 %v3012_v18  ;;  %2350 = vmatprep.subr.bf16.mxu1 %v3012_v18  ;;  %v2635_v19 = vld [vmem:[%s3713_s4] sm:$0xff]   ;;  %v2233_v40 = vld [vmem:[#allocation15] ss:$0 sm:$0xff] }
  0xb0   : > { %750 = vadd.xlane.f32.xlu0 %v749_v4  ;;  %v2634_v17 = vld [vmem:[%s3715_s6 + $0x8] sm:$0xff]   ;;  %2343 = vmatpush3.bf16.msra.mxu0 %v2633_v16  ;;  %v2636_v20 = vld [vmem:[%s3715_s6] sm:$0xff]   ;;  %v2239_v41 = vld [vmem:[#allocation16] ss:$0 sm:$0xff] }
  0xb1   : > { %2351 = vmatpush3.bf16.msra.mxu1 %v2634_v17  ;;  %2344 = vmatprep.subr.bf16.mxu0 %v3012_v18  ;;  %v2231_v29 = vld [vmem:[#allocation10] ss:$0 sm:$0xff]  ;;  %v2232_v33 = vld [vmem:[#allocation13] ss:$0 sm:$0xff]  ;;  %v2638_v39 = vld [vmem:[%s3776_s13] sm:$0xff]  }
  0xb2   : > { %2352 = vmatprep.subr.bf16.mxu1 %v3012_v18  ;;  %2346 = vmatprep.mubr.msk.bf16.mxu0 %vm3013_vm1, %v3012_v18  ;;  %v2637_v37 = vld [vmem:[%s3776_s13 + $0x8] sm:$0xff]   ;;  %v2245_v56 = vld [vmem:[#allocation18] ss:$0 sm:$0xff] }
  0xb3   : > { %2354 = vmatprep.mubr.msk.bf16.mxu1 %vm3013_vm1, %v3012_v18 }
  0xb4   : > { %753 = vadd.xlane.f32.xlu0 %v752_v5  ;;  %2345 = vmatpush3.bf16.msra.mxu0 %v2635_v19 }
  0xb5   : > { %2353 = vmatpush3.bf16.msra.mxu1 %v2636_v20  ;;  %2358 = vmatprep.subr.bf16.mxu0 %v3012_v18 }
 0x139   : > { %v751_v6 = vpop.xlane.xlu0 %750 }
 0x13a   : > { %v756_v7 = vmul.f32 0.03125, %v751_v6 }
 0x13c   : > { %v758_v8 = vsub.f32 %v744_v2, %v756_v7 }
 0x13d   : > { %v754_v9 = vpop.xlane.xlu0 %753 }
 0x13e   : > { %v757_v10 = vmul.f32 0.03125, %v754_v9  ;;  %v760_v11 = vmul.f32 %v758_v8, %v758_v8 }
 0x140   : > { %v759_v12 = vsub.f32 %v745_v3, %v757_v10  ;;  %v762_v13 = vsel %vm748_vm0, %v760_v11, 0.0 }
 0x141   : > { %763 = vadd.xlane.f32.xlu1 %v762_v13 }
 0x142   : > { %v761_v14 = vmul.f32 %v759_v12, %v759_v12 }
 0x144   : > { %v765_v15 = vsel %vm748_vm0, %v761_v14, 0.0 }
 0x145   : > { %766 = vadd.xlane.f32.xlu1 %v765_v15 }
 0x1ca   : > { %v764_v21 = vpop.xlane.xlu1 %763 }
 0x1cb   : > { %v768_v22 = vmul.f32 0.03125, %v764_v21 }
 0x1cd   : > { %v770_v23 = vadd.f32 1e-05, %v768_v22 }
 0x1ce   : > { %v767_v24 = vpop.xlane.xlu1 %766 }
 0x1cf   : > { %2639 = vrsqrt.f32 %v770_v23  ;;  %v769_v25 = vmul.f32 0.03125, %v767_v24 }
 0x1d1   : > { %v771_v26 = vadd.f32 1e-05, %v769_v25 }
 0x1d3   : > { %2641 = vrsqrt.f32 %v771_v26 }
 0x1dc   : > { %v2640_v27 = vpop.eup %2639 }
 0x1dd   : > { %v774_v28 = vmul.f32 %v2640_v27, %v758_v8 }
 0x1df   : > { %v782_v32 = vmul.f32 %v2231_v29, %v774_v28 }
 0x1e0   : > { %v2642_v30 = vpop.eup %2641 }
 0x1e1   : > { %v775_v31 = vmul.f32 %v2642_v30, %v759_v12  ;;  %v790_v35 = vadd.f32 %v2232_v33, %v782_v32 }
 0x1e3   : > { %v783_v34 = vmul.f32 %v2231_v29, %v775_v31 }
 0x1e5   : > { %v791_v36 = vadd.f32 %v2232_v33, %v783_v34 }
 0x1e7   : > { %v792_v38 = vpack.c.bf16 %v791_v36, %v790_v35 }
 0x1e9   : > { %2347 = vmatmul.mubr.msk.bf16.vlgmr.msra.gmra.mxu0 %vm748_vm0, %v792_v38  ;;  %2355 = vmatmul.mubr.msk.bf16.vlgmr.msra.gmra.mxu1 %vm748_vm0, %v792_v38 }
 0x1ea   : > { %2359 = vmatpush3.bf16.msra.mxu0 %v2637_v37  ;;  %2362 = vmatprep.mubr.msk.bf16.mxu0 %vm3013_vm1, %v3012_v18 }
 0x1eb   : > { %2360 = vmatprep.subr.bf16.mxu0 %v3012_v18 }
 0x1ee   : > { %2361 = vmatpush3.bf16.msra.mxu0 %v2638_v39 }
 0x1f1   : > { %2363 = vmatmul.mubr.msk.bf16.vlgmr.msra.gmra.mxu0 %vm748_vm0, %v792_v38 }
 0x2a9   : > { %v853_v42 = vpop.f32.mrf.mxu0  ;;  %v955_v43 = vpop.f32.mrf.mxu1 }
 0x2aa   : > { %v854_v44 = vadd.f32 %v2233_v40, %v853_v42  ;;  %v956_v45 = vadd.f32 %v2239_v41, %v955_v43 }
 0x2ab   : > { %v2348_v46 = vpop.f32.mrf.mxu0  ;;  %v2356_v47 = vpop.f32.mrf.mxu1 }
 0x2ac   : > { %v2293_v48 = vpack.c.bf16 %v854_v44, %v854_v44  ;;  %v2295_v49 = vpack.c.bf16 %v956_v45, %v956_v45 }
 0x2ad   : > { %v856_v50 = vpop.f32.mrf.mxu0  ;;  %v958_v51 = vpop.f32.mrf.mxu1 }
 0x2ae   : > { %869 = vst.msk [vmem:[#allocation2] sm:$0xf] %vm868_vm2, %v2293_v48  ;;  %970 = vst.msk [vmem:[#allocation3] sm:$0xf] %vm868_vm2, %v2295_v49  ;;  %v857_v52 = vadd.f32 %v2233_v40, %v856_v50  ;;  %v959_v53 = vadd.f32 %v2239_v41, %v958_v51  ;;  %880 = vrot.lane.b32.xlu1 %v2293_v48, %s3014_s15  ;;  %871 = vrot.lane.b32.xlu0 %v2293_v48, %s3015_s3 }
 0x2af   : > { %v2349_v54 = vpop.f32.mrf.mxu0  ;;  %v2357_v55 = vpop.f32.mrf.mxu1 }
 0x2b0   : > { %v2294_v57 = vpack.c.bf16 %v857_v52, %v857_v52  ;;  %v2296_v58 = vpack.c.bf16 %v959_v53, %v959_v53 }
 0x2b1   : > { %v1056_v59 = vpop.f32.mrf.mxu0 }
 0x2b2   : > { %870 = vst.msk [vmem:[#allocation2 + $0x4] sm:$0xf] %vm868_vm2, %v2294_v57  ;;  %971 = vst.msk [vmem:[#allocation3 + $0x4] sm:$0xf] %vm868_vm2, %v2296_v58  ;;  %v1057_v60 = vadd.f32 %v2245_v56, %v1056_v59  ;;  %889 = vrot.lane.b32.xlu0 %v2293_v48, %s3016_s25  ;;  %873 = vrot.lane.b32.xlu1 %v2294_v57, %s3015_s3 }
 0x2b3   : > { %v2364_v61 = vpop.f32.mrf.mxu0 }
 0x2b4   : > { %v2297_v62 = vpack.c.bf16 %v1057_v60, %v1057_v60 }
 0x2b5   : > { %v1059_v63 = vpop.f32.mrf.mxu0 }
 0x2b6   : > { %1071 = vst.msk [vmem:[#allocation4] sm:$0xf] %vm868_vm2, %v2297_v62  ;;  %v1060_v0 = vadd.f32 %v2245_v56, %v1059_v63  ;;  %972 = vrot.lane.b32.xlu0 %v2295_v49, %s3015_s3  ;;  %882 = vrot.lane.b32.xlu1 %v2294_v57, %s3014_s15 }
 0x2b7   : > { %v2365_v1 = vpop.f32.mrf.mxu0 }
 0x2b8   : > { %v2298_v2 = vpack.c.bf16 %v1060_v0, %v1060_v0 }
 0x2ba   : > { %1072 = vst.msk [vmem:[#allocation4 + $0x4] sm:$0xf] %vm868_vm2, %v2298_v2  ;;  %981 = vrot.lane.b32.xlu0 %v2295_v49, %s3014_s15  ;;  %891 = vrot.lane.b32.xlu1 %v2294_v57, %s3016_s25 }
 0x2be   : > { %990 = vrot.lane.b32.xlu0 %v2295_v49, %s3016_s25  ;;  %974 = vrot.lane.b32.xlu1 %v2296_v58, %s3015_s3 }
 0x2c2   : > { %983 = vrot.lane.b32.xlu1 %v2296_v58, %s3014_s15  ;;  %1073 = vrot.lane.b32.xlu0 %v2297_v62, %s3015_s3 }
 0x2c6   : > { %992 = vrot.lane.b32.xlu1 %v2296_v58, %s3016_s25  ;;  %1082 = vrot.lane.b32.xlu0 %v2297_v62, %s3014_s15 }
 0x2ca   : > { %1091 = vrot.lane.b32.xlu0 %v2297_v62, %s3016_s25  ;;  %1075 = vrot.lane.b32.xlu1 %v2298_v2, %s3015_s3 }
 0x2ce   : > { %1084 = vrot.lane.b32.xlu1 %v2298_v2, %s3014_s15 }
 0x2d2   : > { %1093 = vrot.lane.b32.xlu1 %v2298_v2, %s3016_s25 }
 0x320   : > { %v881_v3 = vpop.permute.xlu1 %880  ;;  %v872_v4 = vpop.permute.xlu0 %871 }
 0x321   : > { %887 = vst.msk [vmem:[#allocation2 + $0x10] sm:$0xf] %vm868_vm2, %v881_v3  ;;  %878 = vst.msk [vmem:[#allocation2 + $0x8] sm:$0xf] %vm868_vm2, %v872_v4 }
 0x324   : > { %v890_v5 = vpop.permute.xlu0 %889  ;;  %v874_v6 = vpop.permute.xlu1 %873 }
 0x325   : > { %896 = vst.msk [vmem:[#allocation2 + $0x18] sm:$0xf] %vm868_vm2, %v890_v5  ;;  %879 = vst.msk [vmem:[#allocation2 + $0xc] sm:$0xf] %vm868_vm2, %v874_v6 }
 0x328   : > { %v973_v7 = vpop.permute.xlu0 %972  ;;  %v883_v8 = vpop.permute.xlu1 %882 }
 0x329   : > { %979 = vst.msk [vmem:[#allocation3 + $0x8] sm:$0xf] %vm868_vm2, %v973_v7  ;;  %888 = vst.msk [vmem:[#allocation2 + $0x14] sm:$0xf] %vm868_vm2, %v883_v8 }
 0x32c   : > { %v982_v9 = vpop.permute.xlu0 %981  ;;  %v892_v10 = vpop.permute.xlu1 %891 }
 0x32d   : > { %988 = vst.msk [vmem:[#allocation3 + $0x10] sm:$0xf] %vm868_vm2, %v982_v9  ;;  %897 = vst.msk [vmem:[#allocation2 + $0x1c] sm:$0xf] %vm868_vm2, %v892_v10 }
 0x330   : > { %v991_v11 = vpop.permute.xlu0 %990  ;;  %v975_v12 = vpop.permute.xlu1 %974 }
 0x331   : > { %997 = vst.msk [vmem:[#allocation3 + $0x18] sm:$0xf] %vm868_vm2, %v991_v11  ;;  %980 = vst.msk [vmem:[#allocation3 + $0xc] sm:$0xf] %vm868_vm2, %v975_v12 }
 0x334   : > { %v984_v13 = vpop.permute.xlu1 %983  ;;  %v1074_v14 = vpop.permute.xlu0 %1073 }
 0x335   : > { %989 = vst.msk [vmem:[#allocation3 + $0x14] sm:$0xf] %vm868_vm2, %v984_v13  ;;  %1080 = vst.msk [vmem:[#allocation4 + $0x8] sm:$0xf] %vm868_vm2, %v1074_v14 }
 0x338   : > { %v993_v15 = vpop.permute.xlu1 %992  ;;  %v1083_v16 = vpop.permute.xlu0 %1082 }
 0x339   : > { %998 = vst.msk [vmem:[#allocation3 + $0x1c] sm:$0xf] %vm868_vm2, %v993_v15  ;;  %1089 = vst.msk [vmem:[#allocation4 + $0x10] sm:$0xf] %vm868_vm2, %v1083_v16 }
 0x33c   : > { %v1092_v17 = vpop.permute.xlu0 %1091  ;;  %v1076_v18 = vpop.permute.xlu1 %1075 }
 0x33d   : > { %1098 = vst.msk [vmem:[#allocation4 + $0x18] sm:$0xf] %vm868_vm2, %v1092_v17  ;;  %1081 = vst.msk [vmem:[#allocation4 + $0xc] sm:$0xf] %vm868_vm2, %v1076_v18 }
 0x340   : > { %v1085_v19 = vpop.permute.xlu1 %1084 }
 0x341   : > { %1090 = vst.msk [vmem:[#allocation4 + $0x14] sm:$0xf] %vm868_vm2, %v1085_v19 }
 0x344   : > { %v1094_v20 = vpop.permute.xlu1 %1093 }
 0x345   : > { %1099 = vst.msk [vmem:[#allocation4 + $0x1c] sm:$0xf] %vm868_vm2, %v1094_v20 }
 0x346 PF: > { %s2251_s17 = sshll.u32 %s2981_s19, 3  ;;  %vm1109_vm3 = vcmask 7168   ;;  %vm1118_vm4 = vcmask 64512   ;;  %v3017_v21 = vmov -inf   ;;  %v3018_v22 = vmov 0.0   ;;  %s3435_s29 = smov 0  }
 0x347   : > { %s1101_s12 = sshra.s32 %s2251_s17, 3  ;;  %1110 = vst.msk [vmem:[#allocation5] sm:$0xff] %vm1109_vm3, %v3017_v21  ;;  %1111 = vst.msk [vmem:[#allocation5 + $0x8] sm:$0xff] %vm1109_vm3, %v3017_v21 }
 0x348   : > { %1112 = vst.msk [vmem:[#allocation5 + $0x10] sm:$0xff] %vm1109_vm3, %v3017_v21  ;;  %1113 = vst.msk [vmem:[#allocation5 + $0x18] sm:$0xff] %vm1109_vm3, %v3017_v21  ;;  %s2252_s2 = sshll.u32 %s1101_s12, 2 }
 0x349   : > { %1114 = vst.msk [vmem:[#allocation6] sm:$0xff] %vm1109_vm3, %v3018_v22  ;;  %1115 = vst.msk [vmem:[#allocation6 + $0x8] sm:$0xff] %vm1109_vm3, %v3018_v22  ;;  %s1104_s8 = scalar_lea.vmem [#allocation2], %s2252_s2 }
 0x34a   : > { %1116 = vst.msk [vmem:[#allocation6 + $0x10] sm:$0xff] %vm1109_vm3, %v3018_v22  ;;  %1117 = vst.msk [vmem:[#allocation6 + $0x18] sm:$0xff] %vm1109_vm3, %v3018_v22  ;;  %v3427_v23 = vld [vmem:[%s1104_s8] sm:$0xf]  ;;  %v3429_v24 = vld [vmem:[%s1104_s8 + $0x8] sm:$0xf] }
 0x34b   : > { %1119 = vst.msk [vmem:[#allocation7] sm:$0xff] %vm1118_vm4, %v3018_v22  ;;  %1120 = vst.msk [vmem:[#allocation7 + $0x8] sm:$0xff] %vm1118_vm4, %v3018_v22  ;;  %v3431_v25 = vld [vmem:[%s1104_s8 + $0x10] sm:$0xf]  ;;  %v3433_v26 = vld [vmem:[%s1104_s8 + $0x18] sm:$0xf] }
 0x34c   : > { %1121 = vst.msk [vmem:[#allocation7 + $0x10] sm:$0xff] %vm1118_vm4, %v3018_v22  ;;  %1122 = vst.msk [vmem:[#allocation7 + $0x18] sm:$0xff] %vm1118_vm4, %v3018_v22 }
 0x34d LB: >> { %v3019_v27 = vmov 0.0   ;;  %s2253_s26 = sshll.u32 %s3001_s29, 3  ;;  %vm3020_vm5 = vmmov 0   ;;  %v3021_v36 = vmov 0   ;;  %s2260_s25 = sshll.u32 %s3001_s29, 1  ;;  %vm1468_vm8 = vcmask 1043456   ;;  %s3001_s29 = sphi %s3435_s29, %s1128_s29  }
 0x34e   : >> { %2366 = vmatprep.subr.bf16.mxu0 %v3019_v27  ;;  %2372 = vmatprep.subr.bf16.mxu1 %v3019_v27  ;;  %s3447_s23 = sshra.s32 %s2253_s26, 3  ;;  %s1329_s12 = scalar_lea.vmem %s648_s16, %s2260_s25 [#allocation9]  ;;  %v1341_v1 = vld [vmem:[#allocation5] sm:$0xff]  ;;  %v3507_v4 = vld [vmem:[#allocation5 + $0x8] sm:$0xff] }
 0x34f   : >> { %2368 = vmatprep.mubr.msk.bf16.mxu0 %vm3020_vm5, %v3019_v27  ;;  %2374 = vmatprep.mubr.msk.bf16.mxu1 %vm3020_vm5, %v3019_v27  ;;  %s2254_s15 = sshll.u32 %s3447_s23, 2  ;;  %v1330_v37 = vld [vmem:[%s1329_s12] sm:$0x3]  ;;  %v1343_v9 = vld [vmem:[#allocation5 + $0x10] sm:$0xff]  ;;  %v3518_v13 = vld [vmem:[#allocation5 + $0x18] sm:$0xff]  ;;  %s1128_s29 = sadd.s32 1, %s3001_s29  }
 0x350   : >> { %s1133_s3 = scalar_lea.vmem [#allocation3], %s2254_s15  ;;  %2643 = vset.pattern.permute.xlu0 %v3021_v36  ;;  %2644 = vset.pattern.permute.xlu1 %v3021_v36  ;;  %vm1331_vm6 = vnez %v1330_v37  ;;  %s1139_s2 = scalar_lea.vmem [#allocation4], %s2254_s15 }
 0x351   : >> { %v1134_v28 = vld [vmem:[%s1133_s3] sm:$0xf]  ;;  %v1135_v29 = vld [vmem:[%s1133_s3 + $0x8] sm:$0xf]  ;;  %v1136_v32 = vld [vmem:[%s1133_s3 + $0x10] sm:$0xf] }
 0x352   : >> { %v1148_v30 = vsel %vm1118_vm4, %v1134_v28, 0  ;;  %v1194_v31 = vsel %vm1118_vm4, %v1135_v29, 0  ;;  %v1137_v33 = vld [vmem:[%s1133_s3 + $0x18] sm:$0xf]  ;;  %v1240_v34 = vsel %vm1118_vm4, %v1136_v32, 0  ;;  %p1125_p1 = scmp.ge.s32.totalorder %s1128_s29, 2  }
 0x353   : >> { %2367 = vmatpush3.bf16.xpose.msra.mxu0 %v1148_v30  ;;  %2373 = vmatpush3.bf16.xpose.msra.mxu1 %v1194_v31  ;;  %v1286_v35 = vsel %vm1118_vm4, %v1137_v33, 0  ;;  %v1332_v38 = vsel %vm1331_vm6, 16843009, %v3021_v36  ;;  %v1140_v17 = vld [vmem:[%s1139_s2] sm:$0xf]  ;;  %s3779_s8 = sld [smem:[#allocation41_spill]] (%p1125_p1)  ;;  %s1796_s25 = scalar_lea.vmem (%p1125_p1), %s3334_s10, %s2251_s17 }
 0x354   : >> { %2378 = vmatprep.subr.bf16.mxu0 %v3019_v27  ;;  %2384 = vmatprep.subr.bf16.mxu1 %v3019_v27  ;;  %v1333_v39 = vunpack.c.0.s8 %v1332_v38  ;;  %v1470_v19 = vsel %vm1468_vm8, %v1140_v17, 0  ;;  %v1141_v20 = vld [vmem:[%s1139_s2 + $0x8] sm:$0xf]  ;;  %v1142_v29 = vld [vmem:[%s1139_s2 + $0x10] sm:$0xf]  ;;  %vm3023_vm9 = vmmov (%p1125_p1), 0  }
 0x355   : >> { %v1516_v21 = vsel %vm1468_vm8, %v1141_v20, 0  ;;  %v1562_v30 = vsel %vm1468_vm8, %v1142_v29, 0  ;;  %v1143_v31 = vld [vmem:[%s1139_s2 + $0x18] sm:$0xf]  ;;  %s3024_s23 = smov (%p1125_p1), 8   ;;  %vm1699_vm10 = vcmask (%p1125_p1), 60416  }
 0x356   : >> { %vm3479_vm7 = vcmp.ne.s32.totalorder %v1333_v39, 0  ;;  %v1608_v32 = vsel %vm1468_vm8, %v1143_v31, 0  ;;  %s3025_s15 = smov (%p1125_p1), 16   ;;  %s3026_s3 = smov (%p1125_p1), 24   ;;  %vm1708_vm11 = vcmask (%p1125_p1), 126016   ;;  %vm1717_vm12 = vcmask (%p1125_p1), 191616  }
 0x357   : > { %vm1726_vm13 = vcmask (%p1125_p1), 257216   ;;  %vm1752_vm14 = vcmask (%p1125_p1), 261120   ;;  %s3780_s12 = sld [smem:[#allocation45_spill]] (%p1125_p1)  ;;  %s2288_s21 = sshll.u32 (%p1125_p1), %s2985_s1, 1 }
 0x358   : > { %s3781_s26 = sld [smem:[#allocation42_spill]] (%p1125_p1)  ;;  %s2027_s16 = sadd.s32 (%p1125_p1), %s2981_s19, %s2288_s21 }
 0x359   : > { %s3783_s2 = sld [smem:[#allocation44_spill]] (%p1125_p1)  ;;  %s2016_s19 = scalar_lea.sflag (%p1125_p1), [#allocation12], %s729_s5 }
 0x35a   : >> { %2369 = vmatmul.mubr.msk.bf16.vlgmr.msra.gmra.mxu0 %vm1118_vm4, %v3427_v23  ;;  %2375 = vmatmul.mubr.msk.bf16.vlgmr.msra.gmra.mxu1 %vm1118_vm4, %v3429_v24  ;;  %v2663_v24 = vld [vmem:[%s3779_s8 + $0x8] sm:$0xff] (%p1125_p1)   ;;  %s3785_s17 = sld [smem:[#allocation47_spill]] (%p1125_p1)  ;;  %p3786_p2 = scmp.ne.s32.totalorder (%p1125_p1), %s3760_s24, 0 }
 0x35b   : >> { %2379 = vmatpush3.bf16.xpose.msra.mxu0 %v1240_v34  ;;  %2385 = vmatpush3.bf16.xpose.msra.mxu1 %v1286_v35  ;;  %s3027_s21 = smov (%p1125_p1), [#allocation22]  }
 0x35c   : >> { %2380 = vmatprep.mubr.msk.bf16.mxu0 %vm3020_vm5, %v3019_v27  ;;  %2386 = vmatprep.mubr.msk.bf16.mxu1 %vm3020_vm5, %v3019_v27 }
 0x35d   : >> { %2390 = vmatprep.subr.bf16.mxu0 %v3019_v27  ;;  %2396 = vmatprep.subr.bf16.mxu1 %v3019_v27 }
 0x362   : >> { %2381 = vmatmul.mubr.msk.bf16.vlgmr.msra.gmra.mxu0 %vm1118_vm4, %v3431_v25  ;;  %2387 = vmatmul.mubr.msk.bf16.vlgmr.msra.gmra.mxu1 %vm1118_vm4, %v3433_v26  ;;  %v2664_v26 = vld [vmem:[%s3779_s8] sm:$0xff] (%p1125_p1)  }
 0x363   : >> { %2392 = vmatprep.mubr.msk.bf16.mxu0 %vm3020_vm5, %v3019_v27  ;;  %2398 = vmatprep.mubr.msk.bf16.mxu1 %vm3020_vm5, %v3019_v27 }
 0x364   : >> { %2391 = vmatpush3.bf16.msra.mxu0 %v1470_v19  ;;  %2397 = vmatpush3.bf16.msra.mxu1 %v1516_v21 }
 0x365   : >> { %2402 = vmatprep.subr.bf16.mxu0 %v3019_v27  ;;  %2408 = vmatprep.subr.bf16.mxu1 %v3019_v27 }
 0x41a   : >> { %v1184_v41 = vpop.f32.mrf.mxu0  ;;  %v1230_v42 = vpop.f32.mrf.mxu1 }
 0x41b   : >> { %v3485_v43 = vsel %vm3479_vm7, %v1184_v41, -1e+30  ;;  %v3489_v44 = vsel %vm3479_vm7, %v1230_v42, -1e+30 }
 0x41c   : >> { %v2370_v45 = vpop.f32.mrf.mxu0  ;;  %v2376_v46 = vpop.f32.mrf.mxu1  ;;  %v1345_v47 = vsel %vm1118_vm4, %v3485_v43, -inf  ;;  %v1348_v50 = vsel %vm1118_vm4, %v3489_v44, -inf }
 0x41d   : >> { %1346 = vmax.xlane.f32.xlu0 %v1345_v47 }
 0x41e   : >> { %v1187_v48 = vpop.f32.mrf.mxu0  ;;  %v1233_v49 = vpop.f32.mrf.mxu1 }
 0x420   : >> { %v2371_v51 = vpop.f32.mrf.mxu0  ;;  %v2377_v52 = vpop.f32.mrf.mxu1 }
 0x421   : >> { %1349 = vmax.xlane.f32.xlu0 %v1348_v50 }
 0x422   : >> { %v1276_v53 = vpop.f32.mrf.mxu0  ;;  %v1322_v54 = vpop.f32.mrf.mxu1 }
 0x423   : >> { %v3497_v55 = vsel %vm3479_vm7, %v1276_v53, -1e+30  ;;  %v3501_v56 = vsel %vm3479_vm7, %v1322_v54, -1e+30 }
 0x424   : >> { %v2382_v57 = vpop.f32.mrf.mxu0  ;;  %v2388_v58 = vpop.f32.mrf.mxu1  ;;  %v1351_v59 = vsel %vm1118_vm4, %v3497_v55, -inf  ;;  %v1354_v62 = vsel %vm1118_vm4, %v3501_v56, -inf }
 0x425   : >> { %1352 = vmax.xlane.f32.xlu1 %v1351_v59 }
 0x426   : >> { %v1279_v60 = vpop.f32.mrf.mxu0  ;;  %v1325_v61 = vpop.f32.mrf.mxu1 }
 0x428   : >> { %v2383_v63 = vpop.f32.mrf.mxu0  ;;  %v2389_v0 = vpop.f32.mrf.mxu1 }
 0x429   : >> { %1355 = vmax.xlane.f32.xlu1 %v1354_v62  ;;  %v1405_v63 = vld [vmem:[#allocation6] sm:$0xff] }
 0x4a6   : >> { %v1347_v2 = vpop.xlane.xlu0 %1346 }
 0x4a7   : >> { %v1357_v3 = vmax.f32 %v1341_v1, %v1347_v2  ;;  %v1406_v2 = vld [vmem:[#allocation6 + $0x8] sm:$0xff] }
 0x4a9   : >> { %v1361_v5 = vsub.f32 %v1341_v1, %v1357_v3  ;;  %1658 = vst.msk [vmem:[#allocation5] sm:$0xff] %vm1109_vm3, %v1357_v3  ;;  %1375 = vperm.xlu0 %2643, %v1357_v3  }
 0x4aa   : >> { %v1350_v6 = vpop.xlane.xlu0 %1349 }
 0x4ab   : >> { %v1365_v7 = vmul.f32 1.442695, %v1361_v5  ;;  %v3511_v8 = vmax.f32 %v3507_v4, %v1350_v6 }
 0x4ad   : >> { %2645 = vpow2.f32 %v1365_v7  ;;  %v1362_v10 = vsub.f32 %v3507_v4, %v3511_v8  ;;  %1659 = vst.msk [vmem:[#allocation5 + $0x8] sm:$0xff] %vm1109_vm3, %v3511_v8  ;;  %1380 = vperm.xlu1 %2644, %v3511_v8   ;;  %v1407_v8 = vld [vmem:[#allocation6 + $0x10] sm:$0xff] }
 0x4ae   : >> { %v1353_v11 = vpop.xlane.xlu1 %1352 }
 0x4af   : >> { %v1359_v12 = vmax.f32 %v1343_v9, %v1353_v11  ;;  %v1367_v54 = vmul.f32 1.442695, %v1362_v10 }
 0x4b1   : >> { %v1363_v14 = vsub.f32 %v1343_v9, %v1359_v12  ;;  %1660 = vst.msk [vmem:[#allocation5 + $0x10] sm:$0xff] %vm1109_vm3, %v1359_v12  ;;  %1385 = vperm.xlu1 %2644, %v1359_v12   ;;  %v1433_v9 = vld [vmem:[#allocation7] sm:$0xff]  ;;  %v1408_v12 = vld [vmem:[#allocation6 + $0x18] sm:$0xff] }
 0x4b2   : >> { %v1356_v15 = vpop.xlane.xlu1 %1355 }
 0x4b3   : >> { %v3522_v16 = vmax.f32 %v3518_v13, %v1356_v15  ;;  %v1369_v48 = vmul.f32 1.442695, %v1363_v14  ;;  %v1434_v15 = vld [vmem:[#allocation7 + $0x8] sm:$0xff] }
 0x4b5   : >> { %v1364_v18 = vsub.f32 %v3518_v13, %v3522_v16  ;;  %1661 = vst.msk [vmem:[#allocation5 + $0x18] sm:$0xff] %vm1109_vm3, %v3522_v16  ;;  %1390 = vperm.xlu1 %2644, %v3522_v16  }
 0x4ba   : >> { %v2646_v28 = vpop.eup %2645 }
 0x4bb   : >> { %1439 = vperm.xlu1 %2644, %v2646_v28   ;;  %v1409_v0 = vmul.f32 %v2646_v28, %v1405_v63 }
 0x524   : >> { %v1376_v33 = vpop.permute.xlu0 %1375 }
 0x525   : >> { %v1393_v34 = vsub.f32 %v3485_v43, %v1376_v33 }
 0x527   : >> { %v1397_v35 = vmul.f32 1.442695, %v1393_v34 }
 0x528   : >> { %v1381_v36 = vpop.permute.xlu1 %1380 }
 0x529   : >> { %2647 = vpow2.f32 %v1397_v35  ;;  %v1394_v37 = vsub.f32 %v3489_v44, %v1381_v36 }
 0x52b   : >> { %v1399_v38 = vmul.f32 1.442695, %v1394_v37 }
 0x52c   : >> { %v1386_v39 = vpop.permute.xlu1 %1385 }
 0x52d   : >> { %2649 = vpow2.f32 %v1399_v38  ;;  %v1395_v40 = vsub.f32 %v3497_v55, %v1386_v39  ;;  %v1436_v38 = vld [vmem:[#allocation7 + $0x18] sm:$0xff] }
 0x52f   : >> { %v1401_v41 = vmul.f32 1.442695, %v1395_v40 }
 0x530   : >> { %v1391_v42 = vpop.permute.xlu1 %1390 }
 0x531   : >> { %2651 = vpow2.f32 %v1401_v41  ;;  %v1396_v45 = vsub.f32 %v3501_v56, %v1391_v42 }
 0x533   : >> { %v1403_v46 = vmul.f32 1.442695, %v1396_v45 }
 0x535   : >> { %2653 = vpow2.f32 %v1403_v46 }
 0x536   : >> { %v2648_v47 = vpop.eup %2647  ;;  %2655 = vpow2.f32 %v1369_v48  ;;  %v1440_v62 = vpop.permute.xlu1 %1439 }
 0x537   : >> { %v1413_v43 = vsel %vm1118_vm4, %v2648_v47, 0.0  ;;  %v1461_v49 = vpack.c.bf16 %v2648_v47, %v2648_v47  ;;  %2657 = vpow2.f32 %v1367_v54  ;;  %v1457_v14 = vmul.f32 %v1440_v62, %v1433_v9 }
 0x538   : >> { %1414 = vadd.xlane.f32.xlu1 %v1413_v43 }
 0x539   : >> { %2393 = vmatmul.mubr.msk.bf16.vlgmr.msra.gmra.mxu0 %vm1118_vm4, %v1461_v49 }
 0x53a   : >> { %v2650_v44 = vpop.eup %2649  ;;  %2403 = vmatpush3.bf16.msra.mxu0 %v1562_v30  ;;  %2404 = vmatprep.mubr.msk.bf16.mxu0 %vm3020_vm5, %v3019_v27  ;;  %v1435_v30 = vld [vmem:[#allocation7 + $0x10] sm:$0xff] }
 0x53b   : >> { %v1416_v50 = vsel %vm1118_vm4, %v2650_v44, 0.0  ;;  %v1462_v51 = vpack.c.bf16 %v2650_v44, %v2650_v44  ;;  %2430 = vmatprep.subr.bf16.mxu0 (%p1125_p1), %v3018_v22 }
 0x53c   : >> { %1417 = vadd.xlane.f32.xlu0 %v1416_v50 }
 0x53d   : >> { %2399 = vmatmul.mubr.msk.bf16.vlgmr.msra.gmra.mxu1 %vm1118_vm4, %v1462_v51 }
 0x53e   : >> { %v2652_v52 = vpop.eup %2651  ;;  %2409 = vmatpush3.bf16.msra.mxu1 %v1608_v32  ;;  %2410 = vmatprep.mubr.msk.bf16.mxu1 %vm3020_vm5, %v3019_v27  ;;  %v1371_v27 = vmul.f32 1.442695, %v1364_v18 }
 0x53f   : >> { %v1463_v53 = vpack.c.bf16 %v2652_v52, %v2652_v52  ;;  %v1419_v59 = vsel %vm1118_vm4, %v2652_v52, 0.0  ;;  %2414 = vmatprep.subr.bf16.mxu1 (%p1125_p1), %v3018_v22 }
 0x540   : >> { %2659 = vpow2.f32 %v1371_v27 }
 0x541   : >> { %2405 = vmatmul.mubr.msk.bf16.vlgmr.msra.gmra.mxu0 %vm1118_vm4, %v1463_v53 }
 0x542   : >> { %v2654_v55 = vpop.eup %2653  ;;  %2446 = vmatprep.mubr.msk.bf16.mxu0 (%p1125_p1), %vm3023_vm9, %v3018_v22 }
 0x543   : >> { %v1464_v56 = vpack.c.bf16 %v2654_v55, %v2654_v55  ;;  %v2656_v57 = vpop.eup %2655  ;;  %v1422_v60 = vsel %vm1118_vm4, %v2654_v55, 0.0  ;;  %v3022_v55 = vmov (%p1125_p1), 0  }
 0x544   : >> { %v2658_v58 = vpop.eup %2657  ;;  %v1411_v10 = vmul.f32 %v2656_v57, %v1407_v8 }
 0x545   : >> { %2411 = vmatmul.mubr.msk.bf16.vlgmr.msra.gmra.mxu1 %vm1118_vm4, %v1464_v56  ;;  %v1410_v4 = vmul.f32 %v2658_v58, %v1406_v2 }
 0x546   : > { %2415 = vmatpush3.bf16.msra.mxu1 (%p1125_p1), %v2663_v24  ;;  %2418 = vmatprep.mubr.msk.bf16.mxu1 (%p1125_p1), %vm3023_vm9, %v3018_v22 }
 0x547   : > { %2416 = vmatprep.subr.bf16.mxu1 (%p1125_p1), %v3018_v22 }
 0x549   : >> { %1449 = vperm.xlu1 %2644, %v2656_v57  }
 0x54a   : > { %2417 = vmatpush3.bf16.msra.mxu1 (%p1125_p1), %v2664_v26 }
 0x54b   : > { %2422 = vmatprep.subr.bf16.mxu1 (%p1125_p1), %v3018_v22 }
 0x54d   : >> { %v2660_v61 = vpop.eup %2659 }
 0x54e   : >> { %v1412_v18 = vmul.f32 %v2660_v61, %v1408_v12 }
 0x552   : >> { %1444 = vperm.xlu0 %2643, %v2658_v58  }
 0x556   : > { %2661 = vset.pattern.permute.xlu0 (%p1125_p1), %v3022_v55 }
 0x56d   : >> { %1420 = vadd.xlane.f32.xlu1 %v1419_v59 }
 0x571   : >> { %1423 = vadd.xlane.f32.xlu1 %v1422_v60 }
 0x582   : >> { %1454 = vperm.xlu1 %2644, %v2660_v61  }
 0x586   : > { %2662 = vset.pattern.permute.xlu1 (%p1125_p1), %v3022_v55 }
 0x5c1   : >> { %v1415_v1 = vpop.xlane.xlu1 %1414 }
 0x5c2   : >> { %v1425_v3 = vadd.f32 %v1415_v1, %v1409_v0 }
 0x5c4   : >> { %1429 = vst.msk [vmem:[#allocation6] sm:$0xff] %vm1109_vm3, %v1425_v3 }
 0x5c5   : >> { %v1418_v5 = vpop.xlane.xlu0 %1417  ;;  %v1450_v7 = vpop.permute.xlu1 %1449 }
 0x5c6   : >> { %v1426_v6 = vadd.f32 %v1418_v5, %v1410_v4  ;;  %v1459_v36 = vmul.f32 %v1450_v7, %v1435_v30 }
 0x5c8   : >> { %1430 = vst.msk [vmem:[#allocation6 + $0x8] sm:$0xff] %vm1109_vm3, %v1426_v6 }
 0x5cb   : > { %v1666_v56 = vld [vmem:[#allocation6] sm:$0xff] (%p1125_p1) }
 0x5cd   : >> { %v1445_v16 = vpop.permute.xlu0 %1444 }
 0x5ce   : >> { %v1458_v29 = vmul.f32 %v1445_v16, %v1434_v15  ;;  %v1797_v16 = vld [vmem:[%s1796_s25] sm:$0xff] (%p1125_p1) }
 0x5cf   : > { %v1667_v52 = vld [vmem:[#allocation6 + $0x8] sm:$0xff] (%p1125_p1) }
 0x5d0   : > { %2675 = vrcp.f32 (%p1125_p1), %v1667_v52  ;;  %v2673_v52 = vld [vmem:[%s3780_s12 + $0x8] sm:$0xff] (%p1125_p1)  }
 0x5dd   : > { %v2676_v57 = vpop.eup (%p1125_p1), %2675 }
 0x5de   : > { %1681 = vperm.xlu0 (%p1125_p1), %2661, %v2676_v57  }
 0x5f6   : >> { %v1421_v11 = vpop.xlane.xlu1 %1420 }
 0x5f7   : >> { %v1427_v13 = vadd.f32 %v1421_v11, %v1411_v10 }
 0x5f9   : >> { %1431 = vst.msk [vmem:[#allocation6 + $0x10] sm:$0xff] %vm1109_vm3, %v1427_v13  ;;  %v1506_v17 = vpop.f32.mrf.mxu0 }
 0x5fa   : >> { %v1650_v19 = vadd.f32 %v1506_v17, %v1457_v14  ;;  %v1424_v20 = vpop.xlane.xlu1 %1423  ;;  %v2268_v14 = vld [vmem:[#allocation19] ss:$0 sm:$0xff] (%p1125_p1) }
 0x5fb   : >> { %v1428_v21 = vadd.f32 %v1424_v20, %v1412_v18  ;;  %v2394_v28 = vpop.f32.mrf.mxu0 }
 0x5fc   : >> { %1654 = vst.msk [vmem:[#allocation7] sm:$0xff] %vm1118_vm4, %v1650_v19 }
 0x5fd   : >> { %1432 = vst.msk [vmem:[#allocation6 + $0x18] sm:$0xff] %vm1109_vm3, %v1428_v21  ;;  %v1509_v31 = vpop.f32.mrf.mxu0  ;;  %v1552_v32 = vpop.f32.mrf.mxu1 }
 0x5fe   : >> { %v1651_v33 = vadd.f32 %v1552_v32, %v1458_v29  ;;  %v1455_v37 = vpop.permute.xlu1 %1454 }
 0x5ff   : >> { %v2395_v34 = vpop.f32.mrf.mxu0  ;;  %v2400_v35 = vpop.f32.mrf.mxu1  ;;  %v1460_v46 = vmul.f32 %v1455_v37, %v1436_v38  ;;  %v2668_v37 = vld [vmem:[%s3780_s12 + $0x30] sm:$0xff] (%p1125_p1)  }
 0x600   : >> { %1655 = vst.msk [vmem:[#allocation7 + $0x8] sm:$0xff] %vm1118_vm4, %v1651_v33  ;;  %v1668_v54 = vld [vmem:[#allocation6 + $0x10] sm:$0xff] (%p1125_p1)  ;;  %v2665_v34 = vld [vmem:[#allocation21 + $0x8] sm:$0xff] (%p1125_p1)   ;;  %v2666_v35 = vld [vmem:[#allocation21] sm:$0xff] (%p1125_p1)  }
 0x601   : >> { %v1555_v39 = vpop.f32.mrf.mxu1  ;;  %v1598_v40 = vpop.f32.mrf.mxu0 }
 0x602   : >> { %v1652_v41 = vadd.f32 %v1598_v40, %v1459_v36  ;;  %v2667_v36 = vld [vmem:[%s3780_s12 + $0x38] sm:$0xff] (%p1125_p1)  }
 0x603   : >> { %v2401_v42 = vpop.f32.mrf.mxu1  ;;  %v2406_v45 = vpop.f32.mrf.mxu0  ;;  %v1662_v2 = vld [vmem:[#allocation7] sm:$0xff] (%p1125_p1)  ;;  %2431 = vmatpush3.bf16.msra.mxu0 (%p1125_p1), %v2667_v36 }
 0x604   : >> { %1656 = vst.msk [vmem:[#allocation7 + $0x10] sm:$0xff] %vm1118_vm4, %v1652_v41  ;;  %v1669_v53 = vld [vmem:[#allocation6 + $0x18] sm:$0xff] (%p1125_p1)  ;;  %2432 = vmatprep.subr.bf16.mxu0 (%p1125_p1), %v3018_v22  ;;  %v2272_v42 = vld [vmem:[%s3781_s26] ss:$0 sm:$0xff] (%p1125_p1) }
 0x605   : >> { %v1601_v47 = vpop.f32.mrf.mxu0  ;;  %v1644_v48 = vpop.f32.mrf.mxu1  ;;  %2677 = vrcp.f32 (%p1125_p1), %v1669_v53  ;;  %v2674_v53 = vld [vmem:[%s3780_s12] sm:$0xff] (%p1125_p1)  }
 0x606   : >> { %v1653_v43 = vadd.f32 %v1644_v48, %v1460_v46  ;;  %2679 = vrcp.f32 (%p1125_p1), %v1668_v54  ;;  %v2274_v54 = vld [vmem:[%s3783_s2] ss:$0 sm:$0xff] (%p1125_p1) }
 0x607   : >> { %v2407_v49 = vpop.f32.mrf.mxu0  ;;  %v2412_v44 = vpop.f32.mrf.mxu1  ;;  %1127 = sbr.rel (!%p1125_p1) target bundleno = 845 (0x34d), region = 223  ;;  %2681 = vrcp.f32 (%p1125_p1), %v1666_v56  ;;  %v1663_v25 = vld [vmem:[#allocation7 + $0x8] sm:$0xff] (%p1125_p1)  ;;  %2433 = vmatpush3.bf16.msra.mxu0 (%p1125_p1), %v2668_v37 }
 0x608   : >> { %1657 = vst.msk [vmem:[#allocation7 + $0x18] sm:$0xff] %vm1118_vm4, %v1653_v43  ;;  %2434 = vmatprep.subr.bf16.mxu0 (%p1125_p1), %v3018_v22  ;;  %v2669_v49 = vld [vmem:[%s3780_s12 + $0x28] sm:$0xff] (%p1125_p1)   ;;  %v2670_v44 = vld [vmem:[%s3780_s12 + $0x20] sm:$0xff] (%p1125_p1)  }
 0x609   : >> { %v1647_v50 = vpop.f32.mrf.mxu1 }
 0x60a   : > { %v2671_v50 = vld [vmem:[%s3780_s12 + $0x18] sm:$0xff] (%p1125_p1)  }
 0x60b   : >> { %v2413_v51 = vpop.f32.mrf.mxu1  ;;  %v1664_v0 = vld [vmem:[#allocation7 + $0x10] sm:$0xff] (%p1125_p1)  ;;  %2435 = vmatpush3.bf16.msra.mxu0 (%p1125_p1), %v2669_v49 }
 0x60c   : > { %2436 = vmatprep.subr.bf16.mxu0 %v3018_v22  ;;  %v2672_v51 = vld [vmem:[%s3780_s12 + $0x10] sm:$0xff]  }
 0x60f   : > { %v1665_v27 = vld [vmem:[#allocation7 + $0x18] sm:$0xff]  ;;  %2437 = vmatpush3.bf16.msra.mxu0 %v2670_v44 }
 0x610   : > { %2438 = vmatprep.subr.bf16.mxu0 %v3018_v22 }
 0x612   : > { %v2678_v58 = vpop.eup %2677 }
 0x613   : > { %v2680_v59 = vpop.eup %2679  ;;  %1691 = vperm.xlu1 %2662, %v2678_v58   ;;  %2439 = vmatpush3.bf16.msra.mxu0 %v2671_v50 }
 0x614   : > { %v2682_v23 = vpop.eup %2681  ;;  %1686 = vperm.xlu0 %2661, %v2680_v59   ;;  %2440 = vmatprep.subr.bf16.mxu0 %v3018_v22 }
 0x617   : > { %1676 = vperm.xlu1 %2662, %v2682_v23   ;;  %2441 = vmatpush3.bf16.msra.mxu0 %v2672_v51 }
 0x618   : > { %2442 = vmatprep.subr.bf16.mxu0 %v3018_v22 }
 0x61b   : > { %2443 = vmatpush3.bf16.msra.mxu0 %v2673_v52 }
 0x61c   : > { %2444 = vmatprep.subr.bf16.mxu0 %v3018_v22 }
 0x61f   : > { %2445 = vmatpush3.bf16.msra.mxu0 %v2674_v53 }
 0x659   : > { %v1682_v60 = vpop.permute.xlu0 %1681 }
 0x65a   : > { %v1695_v61 = vmul.f32 %v1682_v60, %v1663_v25 }
 0x65c   : > { %v2299_v1 = vpack.c.bf16 %v1695_v61, %v1695_v61 }
 0x65e   : > { %1705 = vrot.lane.b32.xlu0 %v2299_v1, %s3024_s23  ;;  %s3784_s23 = sld [smem:[#allocation46_spill]] }
 0x664   : > { %v2278_v60 = vld [vmem:[%s3784_s23] ss:$0 sm:$0xff] }
 0x68e   : > { %v1692_v62 = vpop.permute.xlu1 %1691 }
 0x68f   : > { %v1697_v63 = vmul.f32 %v1692_v62, %v1665_v27  ;;  %v1687_v3 = vpop.permute.xlu0 %1686 }
 0x690   : > { %v1696_v5 = vmul.f32 %v1687_v3, %v1664_v0 }
 0x691   : > { %v2301_v4 = vpack.c.bf16 %v1697_v63, %v1697_v63 }
 0x692   : > { %v1677_v6 = vpop.permute.xlu1 %1676  ;;  %v2300_v8 = vpack.c.bf16 %v1696_v5, %v1696_v5 }
 0x693   : > { %v1694_v7 = vmul.f32 %v1677_v6, %v1662_v2  ;;  %1723 = vrot.lane.b32.xlu0 %v2301_v4, %s3026_s3  ;;  %s3782_s3 = sld [smem:[#allocation43_spill]] }
 0x694   : > { %1714 = vrot.lane.b32.xlu1 %v2300_v8, %s3025_s15  ;;  %s2289_s15 = sshll.u32 %s2027_s16, 7  ;;  %s2873_s16 = sshll.u32 %s3027_s21, 4  ;;  %s2874_s16 = int_to_ptr.vmem [resolvable:$false] %s2873_s16 }
 0x695   : > { %v1698_v9 = vpack.c.bf16 %v1694_v7, %v1694_v7  ;;  %s3646_s2 = scalar_lea.hbm %s3785_s17, %s2289_s15  ;;  %s2875_s29 = scalar_lea.vmem %s2874_s16, 256 }
 0x697   : > { %1700 = vst.msk [vmem:[#allocation8] sm:$0xf] %vm1699_vm10, %v1698_v9 }
 0x699   : > { %v2273_v46 = vld [vmem:[%s3782_s3] ss:$0 sm:$0xff]  ;;  %s2031_s3 = sshll.u32 %s731_s18, 4  ;;  %s3648_s3 = int_to_ptr.vmem [resolvable:$true] %s2031_s3 }
 0x69a   : > { %s2869_s1 = scalar_lea.vmem %s3648_s3, 128  ;;  %p2876_p0 = scmp.lt.s32.totalorder %s3648_s3, %s2874_s16 }
 0x69b   : > { %p2870_p3 = scmp.ne.s32.totalorder %s3648_s3, %s2869_s1  ;;  %p2877_p4 = scmp.lt.s32.totalorder %s2875_s29, %s2869_s1 }
 0x69d   : > { %p2871_p11 = pnand %p2870_p3, %p3786_p2  ;;  %p2878_p7 = por %p2877_p4, %p2876_p0 }
 0x69f   : > { %p2872_p12 = pneg %p2871_p11 }
 0x6a1   : > { %p2879_p8 = pnand %p2878_p7, %p2872_p12 }
 0x6d0   : > { %v1706_v10 = vpop.permute.xlu0 %1705 }
 0x6d1   : > { %1709 = vst.msk [vmem:[#allocation8] sm:$0xf] %vm1708_vm11, %v1706_v10 }
 0x705   : > { %v1724_v12 = vpop.permute.xlu0 %1723 }
 0x706   : > { %v1715_v11 = vpop.permute.xlu1 %1714 }
 0x707   : > { %1718 = vst.msk [vmem:[#allocation8] sm:$0xf] %vm1717_vm12, %v1715_v11 }
 0x708   : > { %1727 = vst.msk [vmem:[#allocation8] sm:$0xf] %vm1726_vm13, %v1724_v12 }
 0x70f   : > { %v1728_v13 = vld [vmem:[#allocation8] sm:$0xf] }
 0x710   : > { %2419 = vmatmul.mubr.msk.bf16.vlgmr.msra.gmra.mxu1 %vm1752_vm14, %v1728_v13 }
 0x711   : > { %2426 = vmatprep.mubr.msk.bf16.mxu1 %vm3023_vm9, %v3018_v22  ;;  %2423 = vmatpush3.bf16.msra.mxu1 %v2665_v34 }
 0x712   : > { %2424 = vmatprep.subr.bf16.mxu1 %v3018_v22 }
 0x715   : > { %2425 = vmatpush3.bf16.msra.mxu1 %v2666_v35 }
 0x7d0   : > { %v1790_v15 = vpop.f32.mrf.mxu1 }
 0x7d1   : > { %v1791_v17 = vadd.f32 %v2268_v14, %v1790_v15 }
 0x7d2   : > { %v2420_v18 = vpop.f32.mrf.mxu1 }
 0x7d3   : > { %v3587_v19 = vadd.f32 %v1797_v16, %v1791_v17 }
 0x7d4   : > { %v1793_v20 = vpop.f32.mrf.mxu1 }
 0x7d5   : > { %v1801_v21 = vsel %vm1752_vm14, %v3587_v19, 0.0 }
 0x7d6   : > { %1802 = vadd.xlane.f32.xlu1 %v1801_v21  ;;  %v2421_v28 = vpop.f32.mrf.mxu1 }
 0x85f   : > { %v1803_v29 = vpop.xlane.xlu1 %1802 }
 0x860   : > { %v1805_v30 = vmul.f32 0.03125, %v1803_v29 }
 0x862   : > { %v1806_v31 = vsub.f32 %v3587_v19, %v1805_v30 }
 0x864   : > { %v1807_v32 = vmul.f32 %v1806_v31, %v1806_v31 }
 0x866   : > { %v1808_v33 = vsel %vm1752_vm14, %v1807_v32, 0.0 }
 0x867   : > { %1809 = vadd.xlane.f32.xlu0 %v1808_v33 }
 0x8f0   : > { %v1810_v38 = vpop.xlane.xlu0 %1809 }
 0x8f1   : > { %v1811_v39 = vmul.f32 0.03125, %v1810_v38 }
 0x8f3   : > { %v1812_v40 = vadd.f32 1e-05, %v1811_v39 }
 0x8f5   : > { %2683 = vrsqrt.f32 %v1812_v40 }
 0x902   : > { %v2684_v41 = vpop.eup %2683 }
 0x903   : > { %v1814_v45 = vmul.f32 %v2684_v41, %v1806_v31 }
 0x905   : > { %v1821_v47 = vmul.f32 %v2272_v42, %v1814_v45 }
 0x907   : > { %v1828_v48 = vadd.f32 %v2273_v46, %v1821_v47 }
 0x909   : > { %v1829_v43 = vpack.c.bf16 %v1828_v48, %v1828_v48 }
 0x90b   : > { %2427 = vmatmul.mubr.msk.bf16.vlgmr.msra.gmra.mxu1 %vm1752_vm14, %v1829_v43 }
 0x9cb   : > { %v1890_v55 = vpop.f32.mrf.mxu1 }
 0x9cc   : > { %v1891_v56 = vadd.f32 %v2274_v54, %v1890_v55 }
 0x9cd   : > { %v2428_v57 = vpop.f32.mrf.mxu1 }
 0x9ce   : > { %v1897_v58 = vmul.f32 0.70710677, %v1891_v56  ;;  %v1896_v25 = vmul.f32 0.5, %v1891_v56 }
 0x9cf   : > { %v1893_v59 = vpop.f32.mrf.mxu1 }
 0x9d0   : > { %2685 = verf.f32 %v1897_v58 }
 0x9d1   : > { %v2429_v23 = vpop.f32.mrf.mxu1 }
 0x9dd   : > { %v2686_v24 = vpop.eup %2685 }
 0x9de   : > { %v1899_v26 = vadd.f32 1.0, %v2686_v24 }
 0x9e0   : > { %v1900_v22 = vmul.f32 %v1899_v26, %v1896_v25 }
 0x9e2   : > { %v1901_v27 = vpack.c.bf16 %v1900_v22, %v1900_v22 }
 0x9e4   : > { %2447 = vmatmul.mubr.bf16.vlgmr.msra.gmra.mxu0 %v1901_v27 }
 0xaa4   : > { %v2007_v61 = vpop.f32.mrf.mxu0 }
 0xaa5   : > { %v2008_v62 = vadd.f32 %v2278_v60, %v2007_v61 }
 0xaa6   : > { %v2448_v63 = vpop.f32.mrf.mxu0 }
 0xaa7   : > { %v2013_v0 = vadd.f32 %v2008_v62, %v3587_v19 }
 0xaa8   : > { %v2010_v1 = vpop.f32.mrf.mxu0 }
 0xaa9   : > { %2014 = vst.msk [vmem:[%s731_s18] sm:$0xff] %vm1752_vm14, %v2013_v0 }
 0xaaa   : > { %v2449_v2 = vpop.f32.mrf.mxu0 }
 0xaab   : > { %2882 = shalt.err (!%p2879_p8)
}
 0xaac   : > { %s2883_s30 = scalar_lea.hbm %s3646_s2, 128  ;;  %s2887_s26 = scalar_lea.hbm %s3785_s17, 512 }
 0xaad   : > { %p2884_p13 = scmp.ne.s32.totalorder %s3646_s2, %s2883_s30  ;;  %p2888_p10 = scmp.lt.s32.totalorder %s3646_s2, %s3785_s17 }
 0xaae   : > { %p2889_p9 = scmp.lt.s32.totalorder %s2887_s26, %s2883_s30 }
 0xaaf   : > { %p2885_p5 = pnand %p2884_p13, %p3786_p2 }
 0xab0   : > { %p2890_p1 = por %p2889_p9, %p2888_p10 }
 0xab1   : > { %p2886_p6 = pneg %p2885_p5 }
 0xab3   : > { %p2891_p3 = pnand %p2890_p1, %p2886_p6 }
 0xab5   : > { %2894 = shalt.err (!%p2891_p3)
}
 0xab6   : > { %2478 = dma.vmem_to_hbm [thread:$0]  (%p3786_p2), %s3648_s3, 128, %s3646_s2, %s2016_s19  }
 0xab7 PF: > { %s3787_s25 = sld [smem:[#allocation34_spill]]  ;;  %p2520_p11 = scmp.ge.s32.totalorder %s2997_s22, 2 }
 0xab8   : > { %s2043_s10 = sand.u32 1, %s2961_s27  }
 0xab9   : > { %s2044_s1 = scalar_lea.sflag [#allocation12], %s2043_s10 }
 0xabd   : > { %p3788_p12 = scmp.ne.s32.totalorder %s3787_s25, 0 }
 0xabf   : > { %p2503_p0 = pnand %p2520_p11, %p3788_p12 }
 0xac1   : > { %p2504_p4 = pneg %p2503_p0 }
 0xac3   : > { %2956 = dma.done.wait (%p2504_p4), %s2044_s1, 128  }
 0xac4   : > { %2958 = vsyncadd (%p2504_p4), %s2044_s1, 4294967168  ;;  %s35_s22 = sadd.s32 1, %s2997_s22   ;;  %s3789_s24 = sld [smem:[#allocation28_spill]] }
 0xac5   : > { %p32_p7 = scmp.ge.s32.totalorder %s35_s22, 6   ;;  %s3790_s29 = sld [smem:[#allocation33_spill]] }
 0xac6   : > { %s3791_s3 = sld [smem:[#allocation32_spill]]  ;;  %s3795_s27 = smov %s2965_s28 }
 0xac7   : > { %s3792_s1 = sld [smem:[#allocation29_spill]]  ;;  %s3797_s30 = smov %s2977_s0 }
 0xac8   : > { %s3793_s2 = sld [smem:[#allocation30_spill]]  ;;  %s3799_s19 = smov %s2989_s20 }
 0xac9   : > { %s3794_s21 = sld [smem:[#allocation31_spill]] }
 0xaca   : > { %s3796_s28 = smov %s3789_s24  ;;  %34 = sbr.rel (!%p32_p7) target bundleno = 24 (0x18), region = 234 }
 0xacc   : > { %s3798_s0 = smov %s3791_s3 }
 0xace   : > { %s3800_s20 = smov %s3793_s2 }
 0xacf   :  { %2049 = vsyncpa [#allocation11], 1 }
 0xad0   :  { %2051 = vsyncpa [#allocation11 + $0x1], 1 }
 0xad1   :  { %2052 = vsyncpa [#allocation14], 1 }
 0xad2   :  { %2053 = vsyncpa [#allocation17], 1 }
 0xad3   :  { %2054 = vsyncpa [#allocation20], 1 }
 0xad4   :  { %2055 = vsyncpa [#allocation12], 1 }
 0xad5   :  { %2057 = vsyncpa [#allocation12 + $0x1], 1 }

</bundles_post_ra>
